<compile_context>
chip_gen: v7x
topology: tpu7x:2x2x1
jax: 0.10.0
libtpu: 0.0.40
codegen_flags: <defaults>
</compile_context>

<pallas_src>
import math

import numpy as np
import jax
import jax.numpy as jnp
from jax.experimental import pallas as pl
from jax.experimental.pallas import tpu as pltpu

TWO_PI = 2.0 * math.pi


# ----------------------------------------------------------------------------
# Constant precompute (static in lam/size/distance; runs once at trace time).
# TODO(synk): DFT / transfer-function / kron composition is constant setup done in
#             numpy outside Pallas (baked into the jitted graph as constants).
# ----------------------------------------------------------------------------
def make_propagation_matrix(lam, size, distance):
    """Real/imag parts of P^T (HW x HW) with vec(prop(X)) = vec(X) @ P^T (row-major vec).

    prop(X) = ifft2(fftshift(fft2(X)) * Hxfer), exactly as in the PyTorch reference.
    """
    H, W = int(size[0]), int(size[1])
    pixel_size = 0.875 / 1_000_000.0

    # Transfer function on the fftshifted frequency grid.  meshgrid(..., 'xy') matches
    # torch and yields shape (size[1], size[0]); identical to (H, W) for square sizes
    # (the expression is symmetric in fu, fv), same as the reference relies on.
    u = np.fft.fftshift(np.fft.fftfreq(H, pixel_size))
    v = np.fft.fftshift(np.fft.fftfreq(W, pixel_size))
    fu, fv = np.meshgrid(u, v, indexing="xy")
    mask = np.hypot(fu, fv) < (1.0 / lam)
    arg = 1.0 - (lam * fu) ** 2 - (lam * fv) ** 2
    # Inside the mask arg > 0 (exact for these parameters); clamp only avoids NaN*0.
    ph = (TWO_PI * distance / lam) * np.sqrt(np.maximum(arg, 0.0))
    hx = mask.astype(np.complex128) * np.exp(1j * ph)            # (H, W)

    # fftshift-folded DFT / inverse-DFT matrices:
    #   fftshift(fft2(X)) = A @ X @ B        ifft2(K) = C @ K @ D
    FH = np.fft.fft(np.eye(H), axis=0)
    FW = np.fft.fft(np.eye(W), axis=0)
    A = np.fft.fftshift(FH, axes=0)
    B = np.fft.fftshift(FW, axes=0).T
    C = np.fft.ifft(np.eye(H), axis=0)
    D = np.fft.ifft(np.eye(W), axis=0).T

    # Row-major vec identity: vec(M @ X @ N) = kron(M, N^T) @ vec(X).
    fwd = np.kron(A, B.T)                                        # (HW, HW)
    inv = np.kron(C, D.T)
    P = inv @ (hx.reshape(-1)[:, None] * fwd)                    # inv . diag(h) . fwd
    PT = P.T                                                     # row-vector form: y = x @ P^T
    return (jnp.asarray(PT.real, dtype=jnp.float32),
            jnp.asarray(PT.imag, dtype=jnp.float32))


# ----------------------------------------------------------------------------
# Fused ONN kernel: (L+1) propagations + L phase layers + |x|^2, lane-dense layout.
# ----------------------------------------------------------------------------
def _onn_fused_kernel(x_ref, pr_ref, pi_ref, cm_ref, sm_ref, o_ref):
    f32 = jnp.float32
    Pr = pr_ref[...]                      # (HW, HW) real part of P^T
    Pi = pi_ref[...]                      # (HW, HW) imag part of P^T
    cmask = cm_ref[...]                   # (L, HW) cos(2*pi*sigmoid(phase))
    smask = sm_ref[...]                   # (L, HW) sin(2*pi*sigmoid(phase))

    # Propagation 1: the input field is purely real -> 2 matmuls instead of 4.
    xr = x_ref[...]                       # (rows, HW)
    yr = jnp.dot(xr, Pr, preferred_element_type=f32)
    yi = jnp.dot(xr, Pi, preferred_element_type=f32)

    # L x (phase modulation + propagation).  L is tiny -> static unroll.
    # TODO(synk): for large L switch to lax.fori_loop(..., unroll=True) to cap
    #             vreg live ranges.
    num_layers = cmask.shape[0]
    for layer in range(num_layers):
        c = cmask[layer:layer + 1]        # (1, HW)
        s = smask[layer:layer + 1]        # (1, HW)
        zr = yr * c - yi * s              # field * exp(i*2*pi*sigmoid(phase))
        zi = yr * s + yi * c
        yr = (jnp.dot(zr, Pr, preferred_element_type=f32)
              - jnp.dot(zi, Pi, preferred_element_type=f32))
        yi = (jnp.dot(zr, Pi, preferred_element_type=f32)
              + jnp.dot(zi, Pr, preferred_element_type=f32))

    o_ref[...] = yr * yr + yi * yi        # |x|^2, lane-dense (last dim = HW) store


def onn_fused(x2d, ptr, pti, cmask, smask, *, max_block_rows=128):
    N, HW = x2d.shape
    L = cmask.shape[0]
    block_rows = N if N <= max_block_rows else max_block_rows
    n_pad = (-N) % block_rows
    if n_pad:
        x2d = jnp.pad(x2d, ((0, n_pad), (0, 0)))
    n_rows = N + n_pad
    grid = (n_rows // block_rows,)

    row_spec = pl.BlockSpec((block_rows, HW), lambda n: (n, 0))
    mat_spec = pl.BlockSpec((HW, HW), lambda n: (0, 0))
    msk_spec = pl.BlockSpec((L, HW), lambda n: (0, 0))
    # TODO(synk): for a scaled-up H*W, single-buffer the grid-invariant operands
    #             (pipeline_mode=pl.Buffered(1)) and set vmem_limit_bytes explicitly.

    out = pl.pallas_call(
        _onn_fused_kernel,
        out_shape=jax.ShapeDtypeStruct((n_rows, HW), jnp.float32),
        grid=grid,
        in_specs=[row_spec, mat_spec, mat_spec, msk_spec, msk_spec],
        out_specs=row_spec,
        compiler_params=pltpu.CompilerParams(
            dimension_semantics=("parallel",)),
    )(x2d, ptr, pti, cmask, smask)
    return out[:N]


def onn_net_forward(inputs, phase_modulators, lam, size):
    """inputs: (B, C, H, W) float32; phase_modulators: sequence of (H, W) float32."""
    distance = 50 / 1_000_000.0
    B, C, H, W = inputs.shape
    ptr, pti = make_propagation_matrix(lam, size, distance)

    # Phase masks: L*H*W elements -> plain jnp (no dedicated pallas_call), flattened
    # to (L, H*W) so the in-kernel modulation is lane-dense.
    L = len(phase_modulators)
    phases = jnp.stack(list(phase_modulators), axis=0).astype(jnp.float32)
    ang = TWO_PI * jax.nn.sigmoid(phases)
    cmask = jnp.cos(ang).reshape(L, H * W)
    smask = jnp.sin(ang).reshape(L, H * W)

    x2d = inputs.reshape(B * C, H * W).astype(jnp.float32)
    out2d = onn_fused(x2d, ptr, pti, cmask, smask)
    return out2d.reshape(B, C, H, W)


# ----------------------------------------------------------------------------
# Pure-JAX reference (FFT based) for a correctness check of the fused kernel.
# ----------------------------------------------------------------------------
def _reference_forward(inputs, phase_modulators, lam, size):
    distance = 50 / 1_000_000.0
    H, W = int(size[0]), int(size[1])
    pixel_size = 0.875 / 1_000_000.0
    u = np.fft.fftshift(np.fft.fftfreq(H, pixel_size))
    v = np.fft.fftshift(np.fft.fftfreq(W, pixel_size))
    fu, fv = np.meshgrid(u, v, indexing="xy")
    mask = np.hypot(fu, fv) < 1.0 / lam
    arg = np.maximum(1.0 - (lam * fu) ** 2 - (lam * fv) ** 2, 0.0)
    h = mask.astype(np.complex128) * np.exp(1j * TWO_PI * distance / lam * np.sqrt(arg))
    h = jnp.asarray(h, dtype=jnp.complex64)

    def prop(x):
        k = jnp.fft.fftshift(jnp.fft.fft2(x), axes=(-2, -1))
        return jnp.fft.ifft2(k * h)

    x = prop(inputs.astype(jnp.complex64))
    for p in phase_modulators:
        x = x * jnp.exp(1j * TWO_PI * jax.nn.sigmoid(p.astype(jnp.float32)))
        x = prop(x)
    return (jnp.abs(x) ** 2).astype(jnp.float32)


if __name__ == "__main__":
    # Small, deterministic configuration consistent with the PyTorch module.
    B, C = 2, 4
    size = (16, 16)
    num_layers = 3
    lam = 632.8e-9  # HeNe wavelength [m]

    key = jax.random.PRNGKey(0)
    k_in, *k_phase = jax.random.split(key, num_layers + 1)

    inputs = jax.random.uniform(k_in, (B, C, size[0], size[1]), dtype=jnp.float32)
    # torch.nn.Parameter(torch.rand(H, W)) analogue: deterministic U[0,1) init.
    phases = tuple(
        jax.random.uniform(k, (size[0], size[1]), dtype=jnp.float32) for k in k_phase
    )

    fwd = jax.jit(lambda x, p: onn_net_forward(x, p, lam, size))
    out = jax.block_until_ready(fwd(inputs, phases))

    assert out.shape == (B, C, size[0], size[1])
    assert out.dtype == jnp.float32

    ref = _reference_forward(inputs, phases, lam, size)
    max_err = float(jnp.max(jnp.abs(out - ref)))
    assert jnp.allclose(out, ref, rtol=1e-2, atol=1e-3), f"max abs err {max_err}"

    print("KERNEL_OK")
</pallas_src>

<mosaic_0001>
module attributes {stable_mosaic.version = 11 : i64} {
  func.func @_onn_fused_kernel(%arg0: i32, %arg1: memref<8x256xf32, #tpu.memory_space<vmem>>, %arg2: memref<256x256xf32, #tpu.memory_space<vmem>>, %arg3: memref<256x256xf32, #tpu.memory_space<vmem>>, %arg4: memref<3x256xf32, #tpu.memory_space<vmem>>, %arg5: memref<3x256xf32, #tpu.memory_space<vmem>>, %arg6: memref<8x256xf32, #tpu.memory_space<vmem>>) attributes {dimension_semantics = [#tpu.dimension_semantics<parallel>], iteration_bounds = array<i64: 1>, scalar_prefetch = 0 : i64, scratch_operands = 0 : i64, tpu.core_type = #tpu.core_type<tc>, window_params = [{transform_indices = @transform_0, window_bounds = array<i64: 8, 256>}, {pipeline_mode = #tpu.pipeline_mode<synchronous>, transform_indices = @transform_1, window_bounds = array<i64: 256, 256>}, {pipeline_mode = #tpu.pipeline_mode<synchronous>, transform_indices = @transform_2, window_bounds = array<i64: 256, 256>}, {pipeline_mode = #tpu.pipeline_mode<synchronous>, transform_indices = @transform_3, window_bounds = array<i64: 3, 256>}, {pipeline_mode = #tpu.pipeline_mode<synchronous>, transform_indices = @transform_4, window_bounds = array<i64: 3, 256>}, {transform_indices = @transform_5, window_bounds = array<i64: 8, 256>}]} {
    %c0 = arith.constant 0 : index
    %c0_0 = arith.constant 0 : index
    %0 = vector.load %arg2[%c0, %c0_0] : memref<256x256xf32, #tpu.memory_space<vmem>>, vector<256x256xf32>
    %c0_1 = arith.constant 0 : index
    %c0_2 = arith.constant 0 : index
    %1 = vector.load %arg3[%c0_1, %c0_2] : memref<256x256xf32, #tpu.memory_space<vmem>>, vector<256x256xf32>
    %c0_3 = arith.constant 0 : index
    %c0_4 = arith.constant 0 : index
    %2 = vector.load %arg4[%c0_3, %c0_4] : memref<3x256xf32, #tpu.memory_space<vmem>>, vector<3x256xf32>
    %c0_5 = arith.constant 0 : index
    %c0_6 = arith.constant 0 : index
    %3 = vector.load %arg5[%c0_5, %c0_6] : memref<3x256xf32, #tpu.memory_space<vmem>>, vector<3x256xf32>
    %c0_7 = arith.constant 0 : index
    %c0_8 = arith.constant 0 : index
    %4 = vector.load %arg1[%c0_7, %c0_8] : memref<8x256xf32, #tpu.memory_space<vmem>>, vector<8x256xf32>
    %cst = arith.constant dense<0.000000e+00> : vector<8x256xf32>
    %5 = tpu.matmul %4, %0, %cst {dimension_numbers = #tpu.dot_dimension_numbers<[1], [0], [0], [1], [0, 0, 1, 1], [], []>} : vector<8x256xf32>, vector<256x256xf32>, vector<8x256xf32> -> vector<8x256xf32>
    %cst_9 = arith.constant dense<0.000000e+00> : vector<8x256xf32>
    %6 = tpu.matmul %4, %1, %cst_9 {dimension_numbers = #tpu.dot_dimension_numbers<[1], [0], [0], [1], [0, 0, 1, 1], [], []>} : vector<8x256xf32>, vector<256x256xf32>, vector<8x256xf32> -> vector<8x256xf32>
    %7 = vector.extract_strided_slice %2 {offsets = [0, 0], sizes = [1, 256], strides = [1, 1]} : vector<3x256xf32> to vector<1x256xf32>
    %8 = vector.extract_strided_slice %3 {offsets = [0, 0], sizes = [1, 256], strides = [1, 1]} : vector<3x256xf32> to vector<1x256xf32>
    %9 = vector.broadcast %7 : vector<1x256xf32> to vector<8x256xf32>
    %10 = arith.mulf %5, %9 : vector<8x256xf32>
    %11 = vector.broadcast %8 : vector<1x256xf32> to vector<8x256xf32>
    %12 = arith.mulf %6, %11 : vector<8x256xf32>
    %13 = arith.subf %10, %12 : vector<8x256xf32>
    %14 = vector.broadcast %8 : vector<1x256xf32> to vector<8x256xf32>
    %15 = arith.mulf %5, %14 : vector<8x256xf32>
    %16 = vector.broadcast %7 : vector<1x256xf32> to vector<8x256xf32>
    %17 = arith.mulf %6, %16 : vector<8x256xf32>
    %18 = arith.addf %15, %17 : vector<8x256xf32>
    %cst_10 = arith.constant dense<0.000000e+00> : vector<8x256xf32>
    %19 = tpu.matmul %13, %0, %cst_10 {dimension_numbers = #tpu.dot_dimension_numbers<[1], [0], [0], [1], [0, 0, 1, 1], [], []>} : vector<8x256xf32>, vector<256x256xf32>, vector<8x256xf32> -> vector<8x256xf32>
    %cst_11 = arith.constant dense<0.000000e+00> : vector<8x256xf32>
    %20 = tpu.matmul %18, %1, %cst_11 {dimension_numbers = #tpu.dot_dimension_numbers<[1], [0], [0], [1], [0, 0, 1, 1], [], []>} : vector<8x256xf32>, vector<256x256xf32>, vector<8x256xf32> -> vector<8x256xf32>
    %21 = arith.subf %19, %20 : vector<8x256xf32>
    %cst_12 = arith.constant dense<0.000000e+00> : vector<8x256xf32>
    %22 = tpu.matmul %13, %1, %cst_12 {dimension_numbers = #tpu.dot_dimension_numbers<[1], [0], [0], [1], [0, 0, 1, 1], [], []>} : vector<8x256xf32>, vector<256x256xf32>, vector<8x256xf32> -> vector<8x256xf32>
    %cst_13 = arith.constant dense<0.000000e+00> : vector<8x256xf32>
    %23 = tpu.matmul %18, %0, %cst_13 {dimension_numbers = #tpu.dot_dimension_numbers<[1], [0], [0], [1], [0, 0, 1, 1], [], []>} : vector<8x256xf32>, vector<256x256xf32>, vector<8x256xf32> -> vector<8x256xf32>
    %24 = arith.addf %22, %23 : vector<8x256xf32>
    %25 = vector.extract_strided_slice %2 {offsets = [1, 0], sizes = [1, 256], strides = [1, 1]} : vector<3x256xf32> to vector<1x256xf32>
    %26 = vector.extract_strided_slice %3 {offsets = [1, 0], sizes = [1, 256], strides = [1, 1]} : vector<3x256xf32> to vector<1x256xf32>
    %27 = vector.broadcast %25 : vector<1x256xf32> to vector<8x256xf32>
    %28 = arith.mulf %21, %27 : vector<8x256xf32>
    %29 = vector.broadcast %26 : vector<1x256xf32> to vector<8x256xf32>
    %30 = arith.mulf %24, %29 : vector<8x256xf32>
    %31 = arith.subf %28, %30 : vector<8x256xf32>
    %32 = vector.broadcast %26 : vector<1x256xf32> to vector<8x256xf32>
    %33 = arith.mulf %21, %32 : vector<8x256xf32>
    %34 = vector.broadcast %25 : vector<1x256xf32> to vector<8x256xf32>
    %35 = arith.mulf %24, %34 : vector<8x256xf32>
    %36 = arith.addf %33, %35 : vector<8x256xf32>
    %cst_14 = arith.constant dense<0.000000e+00> : vector<8x256xf32>
    %37 = tpu.matmul %31, %0, %cst_14 {dimension_numbers = #tpu.dot_dimension_numbers<[1], [0], [0], [1], [0, 0, 1, 1], [], []>} : vector<8x256xf32>, vector<256x256xf32>, vector<8x256xf32> -> vector<8x256xf32>
    %cst_15 = arith.constant dense<0.000000e+00> : vector<8x256xf32>
    %38 = tpu.matmul %36, %1, %cst_15 {dimension_numbers = #tpu.dot_dimension_numbers<[1], [0], [0], [1], [0, 0, 1, 1], [], []>} : vector<8x256xf32>, vector<256x256xf32>, vector<8x256xf32> -> vector<8x256xf32>
    %39 = arith.subf %37, %38 : vector<8x256xf32>
    %cst_16 = arith.constant dense<0.000000e+00> : vector<8x256xf32>
    %40 = tpu.matmul %31, %1, %cst_16 {dimension_numbers = #tpu.dot_dimension_numbers<[1], [0], [0], [1], [0, 0, 1, 1], [], []>} : vector<8x256xf32>, vector<256x256xf32>, vector<8x256xf32> -> vector<8x256xf32>
    %cst_17 = arith.constant dense<0.000000e+00> : vector<8x256xf32>
    %41 = tpu.matmul %36, %0, %cst_17 {dimension_numbers = #tpu.dot_dimension_numbers<[1], [0], [0], [1], [0, 0, 1, 1], [], []>} : vector<8x256xf32>, vector<256x256xf32>, vector<8x256xf32> -> vector<8x256xf32>
    %42 = arith.addf %40, %41 : vector<8x256xf32>
    %43 = vector.extract_strided_slice %2 {offsets = [2, 0], sizes = [1, 256], strides = [1, 1]} : vector<3x256xf32> to vector<1x256xf32>
    %44 = vector.extract_strided_slice %3 {offsets = [2, 0], sizes = [1, 256], strides = [1, 1]} : vector<3x256xf32> to vector<1x256xf32>
    %45 = vector.broadcast %43 : vector<1x256xf32> to vector<8x256xf32>
    %46 = arith.mulf %39, %45 : vector<8x256xf32>
    %47 = vector.broadcast %44 : vector<1x256xf32> to vector<8x256xf32>
    %48 = arith.mulf %42, %47 : vector<8x256xf32>
    %49 = arith.subf %46, %48 : vector<8x256xf32>
    %50 = vector.broadcast %44 : vector<1x256xf32> to vector<8x256xf32>
    %51 = arith.mulf %39, %50 : vector<8x256xf32>
    %52 = vector.broadcast %43 : vector<1x256xf32> to vector<8x256xf32>
    %53 = arith.mulf %42, %52 : vector<8x256xf32>
    %54 = arith.addf %51, %53 : vector<8x256xf32>
    %cst_18 = arith.constant dense<0.000000e+00> : vector<8x256xf32>
    %55 = tpu.matmul %49, %0, %cst_18 {dimension_numbers = #tpu.dot_dimension_numbers<[1], [0], [0], [1], [0, 0, 1, 1], [], []>} : vector<8x256xf32>, vector<256x256xf32>, vector<8x256xf32> -> vector<8x256xf32>
    %cst_19 = arith.constant dense<0.000000e+00> : vector<8x256xf32>
    %56 = tpu.matmul %54, %1, %cst_19 {dimension_numbers = #tpu.dot_dimension_numbers<[1], [0], [0], [1], [0, 0, 1, 1], [], []>} : vector<8x256xf32>, vector<256x256xf32>, vector<8x256xf32> -> vector<8x256xf32>
    %57 = arith.subf %55, %56 : vector<8x256xf32>
    %cst_20 = arith.constant dense<0.000000e+00> : vector<8x256xf32>
    %58 = tpu.matmul %49, %1, %cst_20 {dimension_numbers = #tpu.dot_dimension_numbers<[1], [0], [0], [1], [0, 0, 1, 1], [], []>} : vector<8x256xf32>, vector<256x256xf32>, vector<8x256xf32> -> vector<8x256xf32>
    %cst_21 = arith.constant dense<0.000000e+00> : vector<8x256xf32>
    %59 = tpu.matmul %54, %0, %cst_21 {dimension_numbers = #tpu.dot_dimension_numbers<[1], [0], [0], [1], [0, 0, 1, 1], [], []>} : vector<8x256xf32>, vector<256x256xf32>, vector<8x256xf32> -> vector<8x256xf32>
    %60 = arith.addf %58, %59 : vector<8x256xf32>
    %61 = arith.mulf %57, %57 : vector<8x256xf32>
    %62 = arith.mulf %60, %60 : vector<8x256xf32>
    %63 = arith.addf %61, %62 : vector<8x256xf32>
    %c0_22 = arith.constant 0 : index
    %c0_23 = arith.constant 0 : index
    %64 = vector.load %arg6[%c0_22, %c0_23] : memref<8x256xf32, #tpu.memory_space<vmem>>, vector<8x256xf32>
    tpu.vector_store %arg6[%c0_22, %c0_23], %63 {strides = array<i32>} : memref<8x256xf32, #tpu.memory_space<vmem>>, vector<8x256xf32>,
    return
  }
  func.func @transform_0(%arg0: i32) -> (i32, i32) {
    %c0_i32 = arith.constant 0 : i32
    %c0_i32_0 = arith.constant 0 : i32
    return %arg0, %c0_i32 : i32, i32
  }
  func.func @transform_1(%arg0: i32) -> (i32, i32) {
    %c0_i32 = arith.constant 0 : i32
    %c0_i32_0 = arith.constant 0 : i32
    %c0_i32_1 = arith.constant 0 : i32
    return %c0_i32, %c0_i32_0 : i32, i32
  }
  func.func @transform_2(%arg0: i32) -> (i32, i32) {
    %c0_i32 = arith.constant 0 : i32
    %c0_i32_0 = arith.constant 0 : i32
    %c0_i32_1 = arith.constant 0 : i32
    return %c0_i32, %c0_i32_0 : i32, i32
  }
  func.func @transform_3(%arg0: i32) -> (i32, i32) {
    %c0_i32 = arith.constant 0 : i32
    %c0_i32_0 = arith.constant 0 : i32
    %c0_i32_1 = arith.constant 0 : i32
    return %c0_i32, %c0_i32_0 : i32, i32
  }
  func.func @transform_4(%arg0: i32) -> (i32, i32) {
    %c0_i32 = arith.constant 0 : i32
    %c0_i32_0 = arith.constant 0 : i32
    %c0_i32_1 = arith.constant 0 : i32
    return %c0_i32, %c0_i32_0 : i32, i32
  }
  func.func @transform_5(%arg0: i32) -> (i32, i32) {
    %c0_i32 = arith.constant 0 : i32
    %c0_i32_0 = arith.constant 0 : i32
    return %arg0, %c0_i32 : i32, i32
  }
}

</mosaic_0001>

<bundles_post_ra>
// kernel: _lambda_.1
= control target key start
LH: loop header
LB: loop body
LE: loop exit
PB: predicated region body
PF: predicated region fallthrough
CT: control target
= control target key end

     0   :  { %10 = vsyncpa [#allocation3], 0  ;;  %s3006_s0 = inlined_call_operand.vmem [shape: f32[8,256], index: 0, kind: input, shape index: {}]   ;;  %s3007_s1 = inlined_call_operand.hbm [shape: f32[256,256], index: 1, kind: input, shape index: {}]   ;;  %s3008_s2 = inlined_call_operand.hbm [shape: f32[256,256], index: 2, kind: input, shape index: {}]   ;;  %s3009_s3 = inlined_call_operand.vmem [shape: f32[3,256], index: 3, kind: input, shape index: {}]   ;;  %s3010_s4 = inlined_call_operand.vmem [shape: f32[3,256], index: 4, kind: input, shape index: {}]   ;;  %s3011_s5 = inlined_call_operand.vmem [shape: f32[8,256], index: 5, kind: output, shape index: {}]  }
   0x1   :  { %11 = vsyncpa [#allocation5], 0  ;;  %s2294_s18 = smov [#allocation2]   ;;  %s2246_s22 = scalar_lea.hbm %s3007_s1, 8192 }
   0x2   :  { %s19_s19 = sshll.u32 %s2294_s18, 4  ;;  %p2247_p0 = scmp.ne.s32.totalorder %s3007_s1, %s2246_s22  ;;  %s20_s19 = int_to_ptr.vmem [resolvable:$true] %s19_s19 }
   0x3   :  { %p2250_p1 = scmp.lt.u32.totalorder %s2246_s22, %s3007_s1 }
   0x5   :  { %p2252_p2 = pnand %p2250_p1, %p2247_p0 }
   0x7   :  { %2255 = shalt.err (!%p2252_p2)
}
   0x8   :  { %s2256_s27 = scalar_lea.vmem %s20_s19, 8192  ;;  %p2261_p4 = scmp.lt.s32.totalorder %s20_s19, %s20_s19 }
   0x9   :  { %p2257_p3 = scmp.ne.s32.totalorder %s20_s19, %s2256_s27  ;;  %p2262_p5 = scmp.lt.s32.totalorder %s2256_s27, %s2256_s27 }
   0xb   :  { %p2263_p6 = por %p2262_p5, %p2261_p4 }
   0xd   :  { %p2264_p7 = pnand %p2263_p6, %p2257_p3 }
   0xf   :  { %2267 = shalt.err (!%p2264_p7)
}
  0x10   :  { %s2295_s28 = smov 256   ;;  %s2296_s29 = smov 16  }
  0x11   :  { %25 = dma.hbm_to_vmem [thread:$0]  %s3007_s1, 8192, %s20_s19, [#allocation3], %s2295_s28, %s2295_s28, %s2296_s29  }
  0x12   :  { %s2297_s7 = smov [#allocation4]   ;;  %s2268_s11 = scalar_lea.hbm %s3008_s2, 8192 }
  0x13   :  { %s31_s8 = sshll.u32 %s2297_s7, 4  ;;  %p2269_p8 = scmp.ne.s32.totalorder %s3008_s2, %s2268_s11  ;;  %s32_s8 = int_to_ptr.vmem [resolvable:$true] %s31_s8 }
  0x14   :  { %p2272_p9 = scmp.lt.u32.totalorder %s2268_s11, %s3008_s2 }
  0x16   :  { %p2274_p10 = pnand %p2272_p9, %p2269_p8 }
  0x18   :  { %2277 = shalt.err (!%p2274_p10)
}
  0x19   :  { %s2278_s16 = scalar_lea.vmem %s32_s8, 8192  ;;  %p2283_p12 = scmp.lt.s32.totalorder %s32_s8, %s32_s8 }
  0x1a   :  { %p2279_p11 = scmp.ne.s32.totalorder %s32_s8, %s2278_s16  ;;  %p2284_p13 = scmp.lt.s32.totalorder %s2278_s16, %s2278_s16 }
  0x1c   :  { %p2285_p0 = por %p2284_p13, %p2283_p12 }
  0x1e   :  { %p2286_p1 = pnand %p2285_p0, %p2279_p11 }
  0x20   :  { %2289 = shalt.err (!%p2286_p1)
}
  0x21   :  { %37 = dma.hbm_to_vmem [thread:$0]  %s3008_s2, 8192, %s32_s8, [#allocation5], %s2295_s28, %s2295_s28, %s2296_s29  }
  0x22   :  { %2290 = dma.done.wait [#allocation3], 8192  }
  0x23   :  { %2291 = vsyncadd [#allocation3], 4294959104 }
  0x24   :  { %2292 = dma.done.wait [#allocation5], 8192  }
  0x25   :  { %2293 = vsyncadd [#allocation5], 4294959104  ;;  %v49_v0 = vld [vmem:[#allocation2 + $0x8] sm:$0xff]  ;;  %v51_v1 = vld [vmem:[#allocation2 + $0x18] sm:$0xff] }
  0x26   :  { %v48_v2 = vld [vmem:[#allocation2] sm:$0xff]  ;;  %v2352_v3 = vpack.c.bf16 %v51_v1, %v49_v0  ;;  %v50_v4 = vld [vmem:[#allocation2 + $0x10] sm:$0xff]  ;;  %v53_v5 = vld [vmem:[#allocation2 + $0x28] sm:$0xff] }
  0x27   :  { %v55_v6 = vld [vmem:[#allocation2 + $0x38] sm:$0xff]  ;;  %v2354_v7 = vpack.c.bf16 %v50_v4, %v48_v2  ;;  %v52_v9 = vld [vmem:[#allocation2 + $0x20] sm:$0xff]  ;;  %v54_v10 = vld [vmem:[#allocation2 + $0x30] sm:$0xff] }
  0x28   :  { %3108 = vst [vmem:[#allocation8_spill] sm:$0xff] %v2352_v3  ;;  %v2356_v8 = vpack.c.bf16 %v55_v6, %v53_v5  ;;  %v57_v11 = vld [vmem:[#allocation2 + $0x48] sm:$0xff]  ;;  %1341 = vmatprep.subr.bf16.mxu1 %v2352_v3  ;;  %v59_v12 = vld [vmem:[#allocation2 + $0x58] sm:$0xff]  ;;  %1469 = vmatprep.subr.bf16.mxu0 %v2352_v3  ;;  %v2361_v13 = vpack.c.bf16 %v54_v10, %v52_v9  ;;  %v56_v15 = vld [vmem:[#allocation2 + $0x40] sm:$0xff] }
  0x29   :  { %1343 = vmatpush1.bf16.msra.mxu1 %v2354_v7  ;;  %1471 = vmatpush1.bf16.msra.mxu0 %v2354_v7  ;;  %v2365_v14 = vpack.c.bf16 %v59_v12, %v57_v11  ;;  %v58_v16 = vld [vmem:[#allocation2 + $0x50] sm:$0xff]  ;;  %v61_v17 = vld [vmem:[#allocation2 + $0x68] sm:$0xff]  ;;  %v63_v18 = vld [vmem:[#allocation2 + $0x78] sm:$0xff] }
  0x2a   :  { %1345 = vmatprep.subr.bf16.mxu1 %v2356_v8  ;;  %1473 = vmatprep.subr.bf16.mxu0 %v2356_v8  ;;  %v2369_v19 = vpack.c.bf16 %v58_v16, %v56_v15  ;;  %v2373_v20 = vpack.c.bf16 %v63_v18, %v61_v17  ;;  %v60_v21 = vld [vmem:[#allocation2 + $0x60] sm:$0xff]  ;;  %v62_v22 = vld [vmem:[#allocation2 + $0x70] sm:$0xff]  ;;  %v65_v23 = vld [vmem:[#allocation2 + $0x88] sm:$0xff] }
  0x2b   :  { %v67_v24 = vld [vmem:[#allocation2 + $0x98] sm:$0xff]  ;;  %v2377_v25 = vpack.c.bf16 %v62_v22, %v60_v21  ;;  %v64_v27 = vld [vmem:[#allocation2 + $0x80] sm:$0xff]  ;;  %v66_v28 = vld [vmem:[#allocation2 + $0x90] sm:$0xff] }
  0x2c   :  { %v2381_v26 = vpack.c.bf16 %v67_v24, %v65_v23  ;;  %v69_v29 = vld [vmem:[#allocation2 + $0xa8] sm:$0xff]  ;;  %v71_v30 = vld [vmem:[#allocation2 + $0xb8] sm:$0xff]  ;;  %v2385_v31 = vpack.c.bf16 %v66_v28, %v64_v27  ;;  %v68_v33 = vld [vmem:[#allocation2 + $0xa0] sm:$0xff] }
  0x2d   :  { %1347 = vmatpush1.bf16.msra.mxu1 %v2361_v13  ;;  %1475 = vmatpush1.bf16.msra.mxu0 %v2361_v13  ;;  %v2389_v32 = vpack.c.bf16 %v71_v30, %v69_v29  ;;  %v70_v34 = vld [vmem:[#allocation2 + $0xb0] sm:$0xff]  ;;  %v73_v35 = vld [vmem:[#allocation2 + $0xc8] sm:$0xff]  ;;  %v75_v36 = vld [vmem:[#allocation2 + $0xd8] sm:$0xff] }
  0x2e   :  { %1349 = vmatprep.subr.bf16.mxu1 %v2365_v14  ;;  %1477 = vmatprep.subr.bf16.mxu0 %v2365_v14  ;;  %3109 = vst [vmem:[#allocation9_spill] sm:$0xff] %v2385_v31  ;;  %v2393_v37 = vpack.c.bf16 %v70_v34, %v68_v33  ;;  %v2397_v38 = vpack.c.bf16 %v75_v36, %v73_v35  ;;  %v72_v39 = vld [vmem:[#allocation2 + $0xc0] sm:$0xff]  ;;  %v74_v40 = vld [vmem:[#allocation2 + $0xd0] sm:$0xff]  ;;  %v2402_v41 = vld [vmem:[%s3006_s0 + $0x8] sm:$0xff] }
  0x2f   :  { %3110 = vst [vmem:[#allocation10_spill] sm:$0xff] %v2389_v32  ;;  %v77_v42 = vld [vmem:[#allocation2 + $0xe8] sm:$0xff]  ;;  %v79_v43 = vld [vmem:[#allocation2 + $0xf8] sm:$0xff]  ;;  %244 = vmatprep.mubr.f32.mxu1 %v2402_v41  ;;  %v2407_v44 = vpack.c.bf16 %v74_v40, %v72_v39  ;;  %v76_v46 = vld [vmem:[#allocation2 + $0xe0] sm:$0xff] }
  0x30   :  { %3111 = vst [vmem:[#allocation11_spill] sm:$0xff] %v2393_v37  ;;  %3112 = vst [vmem:[#allocation12_spill] sm:$0xff] %v2397_v38  ;;  %v2411_v45 = vpack.c.bf16 %v79_v43, %v77_v42  ;;  %v78_v47 = vld [vmem:[#allocation2 + $0xf0] sm:$0xff]  ;;  %v81_v48 = vld [vmem:[#allocation2 + $0x108] sm:$0xff] }
  0x31   :  { %1351 = vmatpush1.bf16.msra.mxu1 %v2369_v19  ;;  %1479 = vmatpush1.bf16.msra.mxu0 %v2369_v19  ;;  %3113 = vst [vmem:[#allocation13_spill] sm:$0xff] %v2407_v44  ;;  %v83_v49 = vld [vmem:[#allocation2 + $0x118] sm:$0xff]  ;;  %v2415_v50 = vpack.c.bf16 %v78_v47, %v76_v46  ;;  %v80_v52 = vld [vmem:[#allocation2 + $0x100] sm:$0xff]  ;;  %v82_v53 = vld [vmem:[#allocation2 + $0x110] sm:$0xff] }
  0x32   :  { %1353 = vmatprep.subr.bf16.mxu1 %v2373_v20  ;;  %1481 = vmatprep.subr.bf16.mxu0 %v2373_v20  ;;  %3114 = vst [vmem:[#allocation14_spill] sm:$0xff] %v2411_v45  ;;  %v2419_v51 = vpack.c.bf16 %v83_v49, %v81_v48  ;;  %v85_v54 = vld [vmem:[#allocation2 + $0x128] sm:$0xff]  ;;  %v87_v55 = vld [vmem:[#allocation2 + $0x138] sm:$0xff]  ;;  %v2423_v56 = vpack.c.bf16 %v82_v53, %v80_v52  ;;  %v84_v58 = vld [vmem:[#allocation2 + $0x120] sm:$0xff] }
  0x33   :  { %3115 = vst [vmem:[#allocation15_spill] sm:$0xff] %v2415_v50  ;;  %v2427_v57 = vpack.c.bf16 %v87_v55, %v85_v54  ;;  %v86_v59 = vld [vmem:[#allocation2 + $0x130] sm:$0xff]  ;;  %v89_v60 = vld [vmem:[#allocation2 + $0x148] sm:$0xff]  ;;  %v91_v61 = vld [vmem:[#allocation2 + $0x158] sm:$0xff] }
  0x34   :  { %3116 = vst [vmem:[#allocation16_spill] sm:$0xff] %v2419_v51  ;;  %3117 = vst [vmem:[#allocation17_spill] sm:$0xff] %v2423_v56  ;;  %v2431_v62 = vpack.c.bf16 %v86_v59, %v84_v58  ;;  %v2435_v63 = vpack.c.bf16 %v91_v61, %v89_v60  ;;  %v88_v0 = vld [vmem:[#allocation2 + $0x140] sm:$0xff]  ;;  %v90_v1 = vld [vmem:[#allocation2 + $0x150] sm:$0xff] }
  0x35   :  { %1355 = vmatpush1.bf16.msra.mxu1 %v2377_v25  ;;  %1483 = vmatpush1.bf16.msra.mxu0 %v2377_v25  ;;  %3118 = vst [vmem:[#allocation18_spill] sm:$0xff] %v2427_v57  ;;  %v93_v2 = vld [vmem:[#allocation2 + $0x168] sm:$0xff]  ;;  %v95_v4 = vld [vmem:[#allocation2 + $0x178] sm:$0xff]  ;;  %v2439_v5 = vpack.c.bf16 %v90_v1, %v88_v0  ;;  %v92_v9 = vld [vmem:[#allocation2 + $0x160] sm:$0xff] }
  0x36   :  { %1357 = vmatprep.subr.bf16.mxu1 %v2381_v26  ;;  %1485 = vmatprep.subr.bf16.mxu0 %v2381_v26  ;;  %3119 = vst [vmem:[#allocation19_spill] sm:$0xff] %v2431_v62  ;;  %3120 = vst [vmem:[#allocation20_spill] sm:$0xff] %v2435_v63  ;;  %v2443_v6 = vpack.c.bf16 %v95_v4, %v93_v2  ;;  %v94_v10 = vld [vmem:[#allocation2 + $0x170] sm:$0xff]  ;;  %v97_v11 = vld [vmem:[#allocation2 + $0x188] sm:$0xff] }
  0x37   :  { %3121 = vst [vmem:[#allocation21_spill] sm:$0xff] %v2439_v5  ;;  %v99_v12 = vld [vmem:[#allocation2 + $0x198] sm:$0xff]  ;;  %v2447_v15 = vpack.c.bf16 %v94_v10, %v92_v9  ;;  %v96_v17 = vld [vmem:[#allocation2 + $0x180] sm:$0xff]  ;;  %v98_v18 = vld [vmem:[#allocation2 + $0x190] sm:$0xff] }
  0x38   :  { %3122 = vst [vmem:[#allocation22_spill] sm:$0xff] %v2443_v6  ;;  %v2451_v16 = vpack.c.bf16 %v99_v12, %v97_v11  ;;  %v101_v21 = vld [vmem:[#allocation2 + $0x1a8] sm:$0xff]  ;;  %v103_v22 = vld [vmem:[#allocation2 + $0x1b8] sm:$0xff]  ;;  %v2455_v23 = vpack.c.bf16 %v98_v18, %v96_v17  ;;  %v100_v27 = vld [vmem:[#allocation2 + $0x1a0] sm:$0xff] }
  0x39   :  { %1359 = vmatpush1.bf16.msra.mxu1 %v2385_v31  ;;  %1487 = vmatpush1.bf16.msra.mxu0 %v2385_v31  ;;  %3123 = vst [vmem:[#allocation23_spill] sm:$0xff] %v2447_v15  ;;  %v2459_v24 = vpack.c.bf16 %v103_v22, %v101_v21  ;;  %v102_v28 = vld [vmem:[#allocation2 + $0x1b0] sm:$0xff]  ;;  %v105_v29 = vld [vmem:[#allocation2 + $0x1c8] sm:$0xff]  ;;  %v107_v30 = vld [vmem:[#allocation2 + $0x1d8] sm:$0xff] }
  0x3a   :  { %1361 = vmatprep.subr.bf16.mxu1 %v2389_v32  ;;  %1489 = vmatprep.subr.bf16.mxu0 %v2389_v32  ;;  %3124 = vst [vmem:[#allocation24_spill] sm:$0xff] %v2451_v16  ;;  %3125 = vst [vmem:[#allocation25_spill] sm:$0xff] %v2455_v23  ;;  %v2463_v33 = vpack.c.bf16 %v102_v28, %v100_v27  ;;  %v2467_v34 = vpack.c.bf16 %v107_v30, %v105_v29  ;;  %v104_v35 = vld [vmem:[#allocation2 + $0x1c0] sm:$0xff]  ;;  %v106_v36 = vld [vmem:[#allocation2 + $0x1d0] sm:$0xff] }
  0x3b   :  { %3126 = vst [vmem:[#allocation26_spill] sm:$0xff] %v2459_v24  ;;  %v109_v39 = vld [vmem:[#allocation2 + $0x1e8] sm:$0xff]  ;;  %v111_v40 = vld [vmem:[#allocation2 + $0x1f8] sm:$0xff]  ;;  %v2471_v42 = vpack.c.bf16 %v106_v36, %v104_v35  ;;  %v108_v46 = vld [vmem:[#allocation2 + $0x1e0] sm:$0xff] }
  0x3c   :  { %3127 = vst [vmem:[#allocation27_spill] sm:$0xff] %v2463_v33  ;;  %3128 = vst [vmem:[#allocation28_spill] sm:$0xff] %v2467_v34  ;;  %v2475_v43 = vpack.c.bf16 %v111_v40, %v109_v39  ;;  %v110_v47 = vld [vmem:[#allocation2 + $0x1f0] sm:$0xff]  ;;  %v113_v48 = vld [vmem:[#allocation4 + $0x8] sm:$0xff] }
  0x3d   :  { %1363 = vmatpush1.bf16.msra.mxu1 %v2393_v37  ;;  %1491 = vmatpush1.bf16.msra.mxu0 %v2393_v37  ;;  %3129 = vst [vmem:[#allocation29_spill] sm:$0xff] %v2471_v42  ;;  %v115_v49 = vld [vmem:[#allocation4 + $0x18] sm:$0xff]  ;;  %v2479_v52 = vpack.c.bf16 %v110_v47, %v108_v46  ;;  %v112_v54 = vld [vmem:[#allocation4] sm:$0xff]  ;;  %v114_v55 = vld [vmem:[#allocation4 + $0x10] sm:$0xff] }
  0x3e   :  { %1365 = vmatprep.subr.bf16.mxu1 %v2397_v38  ;;  %1493 = vmatprep.subr.bf16.mxu0 %v2397_v38  ;;  %3130 = vst [vmem:[#allocation30_spill] sm:$0xff] %v2475_v43  ;;  %v2483_v53 = vpack.c.bf16 %v115_v49, %v113_v48  ;;  %v117_v58 = vld [vmem:[#allocation4 + $0x28] sm:$0xff]  ;;  %v119_v59 = vld [vmem:[#allocation4 + $0x38] sm:$0xff]  ;;  %v2490_v60 = vld [vmem:[%s3006_s0] sm:$0xff]  ;;  %v2492_v61 = vpack.c.bf16 %v114_v55, %v112_v54 }
  0x3f   :  { %3131 = vst [vmem:[#allocation31_spill] sm:$0xff] %v2479_v52  ;;  %v2496_v0 = vpack.c.bf16 %v119_v59, %v117_v58  ;;  %v116_v1 = vld [vmem:[#allocation4 + $0x20] sm:$0xff]  ;;  %v118_v2 = vld [vmem:[#allocation4 + $0x30] sm:$0xff]  ;;  %v121_v4 = vld [vmem:[#allocation4 + $0x48] sm:$0xff] }
  0x40   :  { %3132 = vst [vmem:[#allocation32_spill] sm:$0xff] %v2483_v53  ;;  %v123_v9 = vld [vmem:[#allocation4 + $0x58] sm:$0xff]  ;;  %v2501_v10 = vpack.c.bf16 %v118_v2, %v116_v1  ;;  %v120_v12 = vld [vmem:[#allocation4 + $0x40] sm:$0xff]  ;;  %v122_v17 = vld [vmem:[#allocation4 + $0x50] sm:$0xff] }
  0x41   :  { %1367 = vmatpush1.bf16.msra.mxu1 %v2407_v44  ;;  %1495 = vmatpush1.bf16.msra.mxu0 %v2407_v44  ;;  %v2505_v11 = vpack.c.bf16 %v123_v9, %v121_v4  ;;  %v125_v18 = vld [vmem:[#allocation4 + $0x68] sm:$0xff]  ;;  %v127_v21 = vld [vmem:[#allocation4 + $0x78] sm:$0xff]  ;;  %v2508_v22 = vpack.c.bf16 %v122_v17, %v120_v12  ;;  %v124_v28 = vld [vmem:[#allocation4 + $0x60] sm:$0xff] }
  0x42   :  { %1369 = vmatprep.subr.bf16.mxu1 %v2411_v45  ;;  %1497 = vmatprep.subr.bf16.mxu0 %v2411_v45  ;;  %v2511_v27 = vpack.c.bf16 %v127_v21, %v125_v18  ;;  %v126_v29 = vld [vmem:[#allocation4 + $0x70] sm:$0xff]  ;;  %v129_v30 = vld [vmem:[#allocation4 + $0x88] sm:$0xff]  ;;  %v128_v39 = vld [vmem:[#allocation4 + $0x80] sm:$0xff] }
  0x43   :  { %v2514_v35 = vpack.c.bf16 %v126_v29, %v124_v28  ;;  %v130_v40 = vld [vmem:[#allocation4 + $0x90] sm:$0xff]  ;;  %v133_v46 = vld [vmem:[#allocation4 + $0xa8] sm:$0xff]  ;;  %v135_v47 = vld [vmem:[#allocation4 + $0xb8] sm:$0xff] }
  0x44   :  { %v2520_v48 = vpack.c.bf16 %v130_v40, %v128_v39  ;;  %v2523_v49 = vpack.c.bf16 %v135_v47, %v133_v46  ;;  %v132_v54 = vld [vmem:[#allocation4 + $0xa0] sm:$0xff]  ;;  %v134_v55 = vld [vmem:[#allocation4 + $0xb0] sm:$0xff]  ;;  %v137_v58 = vld [vmem:[#allocation4 + $0xc8] sm:$0xff] }
  0x45   :  { %1371 = vmatpush1.bf16.msra.mxu1 %v2415_v50  ;;  %1499 = vmatpush1.bf16.msra.mxu0 %v2415_v50  ;;  %v139_v59 = vld [vmem:[#allocation4 + $0xd8] sm:$0xff]  ;;  %v2526_v1 = vpack.c.bf16 %v134_v55, %v132_v54  ;;  %v136_v4 = vld [vmem:[#allocation4 + $0xc0] sm:$0xff]  ;;  %v138_v9 = vld [vmem:[#allocation4 + $0xd0] sm:$0xff] }
  0x46   :  { %1373 = vmatprep.subr.bf16.mxu1 %v2419_v51  ;;  %1501 = vmatprep.subr.bf16.mxu0 %v2419_v51  ;;  %v2529_v2 = vpack.c.bf16 %v139_v59, %v137_v58  ;;  %v141_v12 = vld [vmem:[#allocation4 + $0xe8] sm:$0xff]  ;;  %v143_v17 = vld [vmem:[#allocation4 + $0xf8] sm:$0xff]  ;;  %v2532_v18 = vpack.c.bf16 %v138_v9, %v136_v4  ;;  %v140_v28 = vld [vmem:[#allocation4 + $0xe0] sm:$0xff] }
  0x47   :  { %v2535_v21 = vpack.c.bf16 %v143_v17, %v141_v12  ;;  %v142_v29 = vld [vmem:[#allocation4 + $0xf0] sm:$0xff]  ;;  %v144_v46 = vld [vmem:[#allocation4 + $0x100] sm:$0xff]  ;;  %v149_v54 = vld [vmem:[#allocation4 + $0x128] sm:$0xff] }
  0x48   :  { %v2538_v39 = vpack.c.bf16 %v142_v29, %v140_v28  ;;  %v146_v47 = vld [vmem:[#allocation4 + $0x110] sm:$0xff]  ;;  %v151_v55 = vld [vmem:[#allocation4 + $0x138] sm:$0xff]  ;;  %v148_v4 = vld [vmem:[#allocation4 + $0x120] sm:$0xff] }
  0x49   :  { %1375 = vmatpush1.bf16.msra.mxu1 %v2423_v56  ;;  %1503 = vmatpush1.bf16.msra.mxu0 %v2423_v56  ;;  %v2544_v58 = vpack.c.bf16 %v146_v47, %v144_v46  ;;  %v2547_v59 = vpack.c.bf16 %v151_v55, %v149_v54  ;;  %v150_v9 = vld [vmem:[#allocation4 + $0x130] sm:$0xff]  ;;  %v153_v12 = vld [vmem:[#allocation4 + $0x148] sm:$0xff]  ;;  %v155_v17 = vld [vmem:[#allocation4 + $0x158] sm:$0xff] }
  0x4a   :  { %1377 = vmatprep.subr.bf16.mxu1 %v2427_v57  ;;  %1505 = vmatprep.subr.bf16.mxu0 %v2427_v57  ;;  %v2550_v28 = vpack.c.bf16 %v150_v9, %v148_v4  ;;  %v2553_v29 = vpack.c.bf16 %v155_v17, %v153_v12  ;;  %v157_v46 = vld [vmem:[#allocation4 + $0x168] sm:$0xff]  ;;  %v159_v47 = vld [vmem:[#allocation4 + $0x178] sm:$0xff] }
  0x4b   :  { %3133 = vst [vmem:[#allocation33_spill] sm:$0xff] %v2544_v58  ;;  %3134 = vst [vmem:[#allocation34_spill] sm:$0xff] %v2547_v59  ;;  %v2559_v55 = vpack.c.bf16 %v159_v47, %v157_v46  ;;  %v161_v4 = vld [vmem:[#allocation4 + $0x188] sm:$0xff]  ;;  %v163_v9 = vld [vmem:[#allocation4 + $0x198] sm:$0xff] }
  0x4c   :  { %3135 = vst [vmem:[#allocation35_spill] sm:$0xff] %v2550_v28  ;;  %3136 = vst [vmem:[#allocation36_spill] sm:$0xff] %v2553_v29  ;;  %v2565_v17 = vpack.c.bf16 %v163_v9, %v161_v4 }
  0x4d   :  { %1379 = vmatpush1.bf16.msra.mxu1 %v2431_v62  ;;  %1507 = vmatpush1.bf16.msra.mxu0 %v2431_v62  ;;  %3138 = vst [vmem:[#allocation38_spill] sm:$0xff] %v2559_v55 }
  0x4e   :  { %1381 = vmatprep.subr.bf16.mxu1 %v2435_v63  ;;  %1509 = vmatprep.subr.bf16.mxu0 %v2435_v63  ;;  %3140 = vst [vmem:[#allocation40_spill] sm:$0xff] %v2565_v17 }
  0x51   :  { %1383 = vmatpush1.bf16.msra.mxu1 %v2439_v5  ;;  %1511 = vmatpush1.bf16.msra.mxu0 %v2439_v5 }
  0x52   :  { %1385 = vmatprep.subr.bf16.mxu1 %v2443_v6  ;;  %1513 = vmatprep.subr.bf16.mxu0 %v2443_v6  ;;  %v174_v6 = vld [vmem:[#allocation4 + $0x1f0] sm:$0xff] }
  0x55   :  { %1387 = vmatpush1.bf16.msra.mxu1 %v2447_v15  ;;  %1515 = vmatpush1.bf16.msra.mxu0 %v2447_v15  ;;  %v172_v15 = vld [vmem:[#allocation4 + $0x1e0] sm:$0xff] }
  0x56   :  { %1389 = vmatprep.subr.bf16.mxu1 %v2451_v16  ;;  %1517 = vmatprep.subr.bf16.mxu0 %v2451_v16  ;;  %v170_v16 = vld [vmem:[#allocation4 + $0x1d0] sm:$0xff] }
  0x59   :  { %1391 = vmatpush1.bf16.msra.mxu1 %v2455_v23  ;;  %1519 = vmatpush1.bf16.msra.mxu0 %v2455_v23  ;;  %v168_v23 = vld [vmem:[#allocation4 + $0x1c0] sm:$0xff] }
  0x5a   :  { %1393 = vmatprep.subr.bf16.mxu1 %v2459_v24  ;;  %1521 = vmatprep.subr.bf16.mxu0 %v2459_v24  ;;  %v166_v24 = vld [vmem:[#allocation4 + $0x1b0] sm:$0xff] }
  0x5d   :  { %1395 = vmatpush1.bf16.msra.mxu1 %v2463_v33  ;;  %1523 = vmatpush1.bf16.msra.mxu0 %v2463_v33  ;;  %v164_v33 = vld [vmem:[#allocation4 + $0x1a0] sm:$0xff] }
  0x5e   :  { %1397 = vmatprep.subr.bf16.mxu1 %v2467_v34  ;;  %1525 = vmatprep.subr.bf16.mxu0 %v2467_v34  ;;  %v162_v34 = vld [vmem:[#allocation4 + $0x190] sm:$0xff]  ;;  %v2574_v4 = vpack.c.bf16 %v166_v24, %v164_v33  ;;  %v2586_v24 = vpack.c.bf16 %v174_v6, %v172_v15 }
  0x60   :  { %3143 = vst [vmem:[#allocation43_spill] sm:$0xff] %v2574_v4  ;;  %3147 = vst [vmem:[#allocation47_spill] sm:$0xff] %v2586_v24 }
  0x61   :  { %1399 = vmatpush1.bf16.msra.mxu1 %v2471_v42  ;;  %1527 = vmatpush1.bf16.msra.mxu0 %v2471_v42  ;;  %v160_v42 = vld [vmem:[#allocation4 + $0x180] sm:$0xff] }
  0x62   :  { %1401 = vmatprep.subr.bf16.mxu1 %v2475_v43  ;;  %1529 = vmatprep.subr.bf16.mxu0 %v2475_v43  ;;  %v158_v43 = vld [vmem:[#allocation4 + $0x170] sm:$0xff]  ;;  %v2568_v46 = vpack.c.bf16 %v162_v34, %v160_v42  ;;  %v173_v34 = vld [vmem:[#allocation4 + $0x1e8] sm:$0xff]  ;;  %v175_v42 = vld [vmem:[#allocation4 + $0x1f8] sm:$0xff] }
  0x64   :  { %3141 = vst [vmem:[#allocation41_spill] sm:$0xff] %v2568_v46 }
  0x65   :  { %1403 = vmatpush1.bf16.msra.mxu1 %v2479_v52  ;;  %1531 = vmatpush1.bf16.msra.mxu0 %v2479_v52  ;;  %v156_v52 = vld [vmem:[#allocation4 + $0x160] sm:$0xff] }
  0x66   :  { %1405 = vmatprep.subr.bf16.mxu1 %v2483_v53  ;;  %1597 = vmatprep.subr.bf16.mxu0 %v2352_v3  ;;  %v2562_v12 = vpack.c.bf16 %v158_v43, %v156_v52  ;;  %v169_v43 = vld [vmem:[#allocation4 + $0x1c8] sm:$0xff]  ;;  %v171_v52 = vld [vmem:[#allocation4 + $0x1d8] sm:$0xff] }
  0x67   :  { %v2577_v9 = vpack.c.bf16 %v171_v52, %v169_v43  ;;  %v2635_v43 = vld [vmem:[%s3010_s4] sm:$0x77] }
  0x68   :  { %245 = vmatmul.mubr.f32.vlgmr.msra.gmra.mrb[0].mxu1 %v2490_v60  ;;  %3139 = vst [vmem:[#allocation39_spill] sm:$0xff] %v2562_v12 }
  0x69   :  { %1407 = vmatpush1.bf16.msra.mxu1 %v2492_v61  ;;  %315 = vmatprep.mubr.f32.mxu1 %v2402_v41  ;;  %v131_v41 = vld [vmem:[#allocation4 + $0x98] sm:$0xff]  ;;  %3144 = vst [vmem:[#allocation44_spill] sm:$0xff] %v2577_v9 }
  0x6a   :  { %1409 = vmatprep.subr.bf16.mxu1 %v2496_v0  ;;  %v2517_v36 = vpack.c.bf16 %v131_v41, %v129_v30  ;;  %v145_v30 = vld [vmem:[#allocation4 + $0x108] sm:$0xff]  ;;  %v147_v41 = vld [vmem:[#allocation4 + $0x118] sm:$0xff] }
  0x6b   :  { %v2541_v40 = vpack.c.bf16 %v147_v41, %v145_v30  ;;  %v152_v30 = vld [vmem:[#allocation4 + $0x140] sm:$0xff]  ;;  %v154_v41 = vld [vmem:[#allocation4 + $0x150] sm:$0xff] }
  0x6c   :  { %v2556_v54 = vpack.c.bf16 %v154_v41, %v152_v30  ;;  %v165_v30 = vld [vmem:[#allocation4 + $0x1a8] sm:$0xff]  ;;  %v167_v41 = vld [vmem:[#allocation4 + $0x1b8] sm:$0xff] }
  0x6d   :  { %1411 = vmatpush1.bf16.msra.mxu1 %v2501_v10  ;;  %v2571_v47 = vpack.c.bf16 %v167_v41, %v165_v30  ;;  %v2580_v30 = vpack.c.bf16 %v170_v16, %v168_v23  ;;  %v2583_v41 = vpack.c.bf16 %v175_v42, %v173_v34  ;;  %v323_v16 = vlaneseq }
  0x6e   :  { %1413 = vmatprep.subr.bf16.mxu1 %v2505_v11  ;;  %3137 = vst [vmem:[#allocation37_spill] sm:$0xff] %v2556_v54 }
  0x6f   :  { %3142 = vst [vmem:[#allocation42_spill] sm:$0xff] %v2571_v47  ;;  %3145 = vst [vmem:[#allocation45_spill] sm:$0xff] %v2580_v30  ;;  %v2624_v23 = vshrl.u32 %v323_v16, 7 }
  0x70   :  { %3146 = vst [vmem:[#allocation46_spill] sm:$0xff] %v2583_v41 }
  0x71   :  { %1415 = vmatpush1.bf16.msra.mxu1 %v2508_v22  ;;  %3148 = vst [vmem:[#allocation48_spill] sm:$0xff] %v2624_v23  ;;  %v325_v33 = vsub.s32 0, %v2624_v23  ;;  %v329_v52 = vsub.s32 4, %v2624_v23 }
  0x72   :  { %1417 = vmatprep.subr.bf16.mxu1 %v2511_v27 }
  0x73   :  { %v347_v42 = vrot.slane %v2635_v43, %v325_v33 }
  0x75   :  { %1419 = vmatpush1.bf16.msra.mxu1 %v2514_v35 }
  0x76   :  { %1421 = vmatprep.subr.bf16.mxu1 %v2517_v36 }
  0x79   :  { %1423 = vmatpush1.bf16.msra.mxu1 %v2520_v48 }
  0x7a   :  { %1425 = vmatprep.subr.bf16.mxu1 %v2523_v49 }
  0x7d   :  { %1427 = vmatpush1.bf16.msra.mxu1 %v2526_v1 }
  0x7e   :  { %1429 = vmatprep.subr.bf16.mxu1 %v2529_v2 }
  0x81   :  { %1431 = vmatpush1.bf16.msra.mxu1 %v2532_v18 }
  0x82   :  { %1433 = vmatprep.subr.bf16.mxu1 %v2535_v21 }
  0x85   :  { %1435 = vmatpush1.bf16.msra.mxu1 %v2538_v39 }
  0x86   :  { %1437 = vmatprep.subr.bf16.mxu1 %v2541_v40 }
  0x89   :  { %1439 = vmatpush1.bf16.msra.mxu1 %v2544_v58 }
  0x8a   :  { %1441 = vmatprep.subr.bf16.mxu1 %v2547_v59 }
  0x8d   :  { %1443 = vmatpush1.bf16.msra.mxu1 %v2550_v28 }
  0x8e   :  { %1445 = vmatprep.subr.bf16.mxu1 %v2553_v29 }
  0x91   :  { %1447 = vmatpush1.bf16.msra.mxu1 %v2556_v54 }
  0x92   :  { %1449 = vmatprep.subr.bf16.mxu1 %v2559_v55 }
  0x95   :  { %1451 = vmatpush1.bf16.msra.mxu1 %v2562_v12 }
  0x96   :  { %1453 = vmatprep.subr.bf16.mxu1 %v2565_v17 }
  0x99   :  { %1455 = vmatpush1.bf16.msra.mxu1 %v2568_v46 }
  0x9a   :  { %1457 = vmatprep.subr.bf16.mxu1 %v2571_v47 }
  0x9d   :  { %1459 = vmatpush1.bf16.msra.mxu1 %v2574_v4 }
  0x9e   :  { %1461 = vmatprep.subr.bf16.mxu1 %v2577_v9 }
  0xa1   :  { %1463 = vmatpush1.bf16.msra.mxu1 %v2580_v30 }
  0xa2   :  { %1465 = vmatprep.subr.bf16.mxu1 %v2583_v41 }
  0xa5   :  { %1467 = vmatpush1.bf16.msra.mxu1 %v2586_v24 }
  0xa6   :  { %1533 = vmatprep.subr.bf16.mxu1 %v2483_v53 }
  0xa8   :  { %316 = vmatmul.mubr.f32.vlgmr.msra.gmra.mrb[2].mxu1 %v2490_v60  ;;  %v2630_v60 = vld [vmem:[%s3009_s3] sm:$0x77] }
  0xa9   :  { %1535 = vmatpush1.bf16.msra.mxu1 %v2492_v61  ;;  %3149 = vst [vmem:[#allocation49_spill] sm:$0xff] %v2630_v60  ;;  %v326_v34 = vrot.slane %v2630_v60, %v325_v33  ;;  %v330_v16 = vrot.slane %v2630_v60, %v329_v52 }
  0xaa   :  { %1537 = vmatprep.subr.bf16.mxu1 %v2496_v0 }
  0xad   :  { %1539 = vmatpush1.bf16.msra.mxu1 %v2501_v10 }
  0xae   :  { %1541 = vmatprep.subr.bf16.mxu1 %v2505_v11 }
  0xb1   :  { %1543 = vmatpush1.bf16.msra.mxu1 %v2508_v22 }
  0xb2   :  { %1545 = vmatprep.subr.bf16.mxu1 %v2511_v27 }
  0xb5   :  { %1547 = vmatpush1.bf16.msra.mxu1 %v2514_v35 }
  0xb6   :  { %1549 = vmatprep.subr.bf16.mxu1 %v2517_v36 }
  0xb9   :  { %1551 = vmatpush1.bf16.msra.mxu1 %v2520_v48 }
  0xba   :  { %1553 = vmatprep.subr.bf16.mxu1 %v2523_v49 }
  0xbd   :  { %1555 = vmatpush1.bf16.msra.mxu1 %v2526_v1 }
  0xbe   :  { %1557 = vmatprep.subr.bf16.mxu1 %v2529_v2 }
  0xc1   :  { %1559 = vmatpush1.bf16.msra.mxu1 %v2532_v18 }
  0xc2   :  { %1561 = vmatprep.subr.bf16.mxu1 %v2535_v21 }
  0xc5   :  { %1563 = vmatpush1.bf16.msra.mxu1 %v2538_v39 }
  0xc6   :  { %1565 = vmatprep.subr.bf16.mxu1 %v2541_v40 }
  0xc9   :  { %1567 = vmatpush1.bf16.msra.mxu1 %v2544_v58 }
  0xca   :  { %1569 = vmatprep.subr.bf16.mxu1 %v2547_v59 }
  0xcd   :  { %1571 = vmatpush1.bf16.msra.mxu1 %v2550_v28 }
  0xce   :  { %1573 = vmatprep.subr.bf16.mxu1 %v2553_v29 }
  0xd1   :  { %1575 = vmatpush1.bf16.msra.mxu1 %v2556_v54 }
  0xd2   :  { %1577 = vmatprep.subr.bf16.mxu1 %v2559_v55 }
  0xd5   :  { %1579 = vmatpush1.bf16.msra.mxu1 %v2562_v12 }
  0xd6   :  { %1581 = vmatprep.subr.bf16.mxu1 %v2565_v17 }
  0xd9   :  { %1583 = vmatpush1.bf16.msra.mxu1 %v2568_v46 }
  0xda   :  { %1585 = vmatprep.subr.bf16.mxu1 %v2571_v47 }
  0xdd   :  { %1587 = vmatpush1.bf16.msra.mxu1 %v2574_v4 }
  0xde   :  { %1589 = vmatprep.subr.bf16.mxu1 %v2577_v9 }
  0xe1   :  { %1591 = vmatpush1.bf16.msra.mxu1 %v2580_v30  ;;  %v340_v30 = vrot.slane %v330_v16, %v325_v33  ;;  %v3172_v16 = vld [vmem:[#allocation45_spill] sm:$0xff] }
  0xe2   :  { %1593 = vmatprep.subr.bf16.mxu1 %v2583_v41  ;;  %v357_v41 = vrot.slane %v347_v42, %v325_v33  ;;  %v3171_v42 = vld [vmem:[#allocation44_spill] sm:$0xff] }
  0xe5   :  { %1595 = vmatpush1.bf16.msra.mxu1 %v2586_v24  ;;  %v336_v24 = vrot.slane %v326_v34, %v325_v33  ;;  %v3170_v34 = vld [vmem:[#allocation43_spill] sm:$0xff] }
  0xe6   :  { %1725 = vmatprep.subr.bf16.mxu1 %v2352_v3  ;;  %v351_v3 = vrot.slane %v2635_v43, %v329_v52 }
  0xe8   :  { %v361_v9 = vrot.slane %v351_v3, %v325_v33  ;;  %v3150_v3 = vld [vmem:[#allocation22_spill] sm:$0xff]  ;;  %v3168_v33 = vld [vmem:[#allocation41_spill] sm:$0xff] }
 0x13b   :  { %v246_v6 = vpop.f32.mrb[0].mxu1 }
 0x13c   :  { %v248_v15 = vpop.f32.mrb[1].mxu1  ;;  %v341_v47 = vmul.f32 %v336_v24, %v246_v6  ;;  %v366_v46 = vmul.f32 %v357_v41, %v246_v6  ;;  %v3165_v6 = vld [vmem:[#allocation38_spill] sm:$0xff] }
 0x13d   :  { %v342_v54 = vmul.f32 %v340_v30, %v248_v15  ;;  %v367_v23 = vmul.f32 %v361_v9, %v248_v15  ;;  %v3166_v15 = vld [vmem:[#allocation39_spill] sm:$0xff] }
 0x17b   :  { %v317_v4 = vpop.f32.mrb[2].mxu1 }
 0x17c   :  { %v362_v17 = vmul.f32 %v357_v41, %v317_v4  ;;  %v368_v12 = vmul.f32 %v336_v24, %v317_v4  ;;  %v319_v55 = vpop.f32.mrb[3].mxu1  ;;  %v3159_v4 = vld [vmem:[#allocation31_spill] sm:$0xff]  ;;  %v3163_v41 = vld [vmem:[#allocation36_spill] sm:$0xff]  ;;  %v3164_v24 = vld [vmem:[#allocation37_spill] sm:$0xff] }
 0x17d   :  { %v363_v29 = vmul.f32 %v361_v9, %v319_v55  ;;  %v369_v28 = vmul.f32 %v340_v30, %v319_v55  ;;  %v3154_v55 = vld [vmem:[#allocation26_spill] sm:$0xff]  ;;  %v3162_v30 = vld [vmem:[#allocation35_spill] sm:$0xff] }
 0x17e   :  { %v2642_v59 = vsub.f32 %v341_v47, %v362_v17  ;;  %v2644_v58 = vadd.f32 %v368_v12, %v366_v46  ;;  %v3155_v12 = vld [vmem:[#allocation27_spill] sm:$0xff]  ;;  %v3156_v17 = vld [vmem:[#allocation28_spill] sm:$0xff]  ;;  %v3157_v46 = vld [vmem:[#allocation29_spill] sm:$0xff] }
 0x17f   :  { %v371_v60 = vadd.f32 %v369_v28, %v367_v23  ;;  %v2646_v52 = vsub.f32 %v342_v54, %v363_v29  ;;  %v3151_v28 = vld [vmem:[#allocation23_spill] sm:$0xff]  ;;  %v3152_v29 = vld [vmem:[#allocation24_spill] sm:$0xff]  ;;  %v3153_v54 = vld [vmem:[#allocation25_spill] sm:$0xff] }
 0x180   :  { %v3158_v47 = vld [vmem:[#allocation30_spill] sm:$0xff]  ;;  %v3167_v23 = vld [vmem:[#allocation40_spill] sm:$0xff] }
 0x181   :  { %436 = vmatprep.mubr.f32.mxu0 %v2646_v52  ;;  %507 = vmatprep.mubr.f32.mxu1 %v371_v60  ;;  %v3161_v9 = vld [vmem:[#allocation34_spill] sm:$0xff] }
 0x182   :  { %437 = vmatmul.mubr.f32.vlgmr.msra.gmra.mrb[0].mxu0 %v2642_v59  ;;  %508 = vmatmul.mubr.f32.vlgmr.msra.gmra.mrb[4].mxu1 %v2644_v58 }
 0x183   :  { %1599 = vmatpush1.bf16.msra.mxu0 %v2354_v7  ;;  %580 = vmatprep.mubr.f32.mxu0 %v371_v60  ;;  %v3169_v60 = vld [vmem:[#allocation42_spill] sm:$0xff] }
 0x184   :  { %1601 = vmatprep.subr.bf16.mxu0 %v2356_v8  ;;  %1727 = vmatpush1.bf16.msra.mxu1 %v2354_v7 }
 0x185   :  { %1729 = vmatprep.subr.bf16.mxu1 %v2356_v8 }
 0x187   :  { %1603 = vmatpush1.bf16.msra.mxu0 %v2361_v13 }
 0x188   :  { %1605 = vmatprep.subr.bf16.mxu0 %v2365_v14  ;;  %1731 = vmatpush1.bf16.msra.mxu1 %v2361_v13 }
 0x189   :  { %1733 = vmatprep.subr.bf16.mxu1 %v2365_v14 }
 0x18b   :  { %1607 = vmatpush1.bf16.msra.mxu0 %v2369_v19 }
 0x18c   :  { %1609 = vmatprep.subr.bf16.mxu0 %v2373_v20  ;;  %1735 = vmatpush1.bf16.msra.mxu1 %v2369_v19 }
 0x18d   :  { %1737 = vmatprep.subr.bf16.mxu1 %v2373_v20 }
 0x18f   :  { %1611 = vmatpush1.bf16.msra.mxu0 %v2377_v25 }
 0x190   :  { %1613 = vmatprep.subr.bf16.mxu0 %v2381_v26  ;;  %1739 = vmatpush1.bf16.msra.mxu1 %v2377_v25 }
 0x191   :  { %1741 = vmatprep.subr.bf16.mxu1 %v2381_v26 }
 0x193   :  { %1615 = vmatpush1.bf16.msra.mxu0 %v2385_v31 }
 0x194   :  { %1617 = vmatprep.subr.bf16.mxu0 %v2389_v32  ;;  %1743 = vmatpush1.bf16.msra.mxu1 %v2385_v31 }
 0x195   :  { %1745 = vmatprep.subr.bf16.mxu1 %v2389_v32 }
 0x197   :  { %1619 = vmatpush1.bf16.msra.mxu0 %v2393_v37 }
 0x198   :  { %1621 = vmatprep.subr.bf16.mxu0 %v2397_v38  ;;  %1747 = vmatpush1.bf16.msra.mxu1 %v2393_v37 }
 0x199   :  { %1749 = vmatprep.subr.bf16.mxu1 %v2397_v38 }
 0x19b   :  { %1623 = vmatpush1.bf16.msra.mxu0 %v2407_v44 }
 0x19c   :  { %1625 = vmatprep.subr.bf16.mxu0 %v2411_v45  ;;  %1751 = vmatpush1.bf16.msra.mxu1 %v2407_v44 }
 0x19d   :  { %1753 = vmatprep.subr.bf16.mxu1 %v2411_v45 }
 0x19f   :  { %1627 = vmatpush1.bf16.msra.mxu0 %v2415_v50 }
 0x1a0   :  { %1629 = vmatprep.subr.bf16.mxu0 %v2419_v51  ;;  %1755 = vmatpush1.bf16.msra.mxu1 %v2415_v50 }
 0x1a1   :  { %1757 = vmatprep.subr.bf16.mxu1 %v2419_v51 }
 0x1a3   :  { %1631 = vmatpush1.bf16.msra.mxu0 %v2423_v56 }
 0x1a4   :  { %1633 = vmatprep.subr.bf16.mxu0 %v2427_v57  ;;  %1759 = vmatpush1.bf16.msra.mxu1 %v2423_v56 }
 0x1a5   :  { %1761 = vmatprep.subr.bf16.mxu1 %v2427_v57 }
 0x1a7   :  { %1635 = vmatpush1.bf16.msra.mxu0 %v2431_v62 }
 0x1a8   :  { %1637 = vmatprep.subr.bf16.mxu0 %v2435_v63  ;;  %1763 = vmatpush1.bf16.msra.mxu1 %v2431_v62 }
 0x1a9   :  { %1765 = vmatprep.subr.bf16.mxu1 %v2435_v63 }
 0x1ab   :  { %1639 = vmatpush1.bf16.msra.mxu0 %v2439_v5 }
 0x1ac   :  { %1641 = vmatprep.subr.bf16.mxu0 %v3150_v3  ;;  %1767 = vmatpush1.bf16.msra.mxu1 %v2439_v5 }
 0x1ad   :  { %1769 = vmatprep.subr.bf16.mxu1 %v3150_v3 }
 0x1af   :  { %1643 = vmatpush1.bf16.msra.mxu0 %v3151_v28 }
 0x1b0   :  { %1645 = vmatprep.subr.bf16.mxu0 %v3152_v29  ;;  %1771 = vmatpush1.bf16.msra.mxu1 %v3151_v28 }
 0x1b1   :  { %1773 = vmatprep.subr.bf16.mxu1 %v3152_v29 }
 0x1b3   :  { %1647 = vmatpush1.bf16.msra.mxu0 %v3153_v54 }
 0x1b4   :  { %1649 = vmatprep.subr.bf16.mxu0 %v3154_v55  ;;  %1775 = vmatpush1.bf16.msra.mxu1 %v3153_v54 }
 0x1b5   :  { %1777 = vmatprep.subr.bf16.mxu1 %v3154_v55 }
 0x1b7   :  { %1651 = vmatpush1.bf16.msra.mxu0 %v3155_v12 }
 0x1b8   :  { %1653 = vmatprep.subr.bf16.mxu0 %v3156_v17  ;;  %1779 = vmatpush1.bf16.msra.mxu1 %v3155_v12 }
 0x1b9   :  { %1781 = vmatprep.subr.bf16.mxu1 %v3156_v17 }
 0x1bb   :  { %1655 = vmatpush1.bf16.msra.mxu0 %v3157_v46 }
 0x1bc   :  { %1657 = vmatprep.subr.bf16.mxu0 %v3158_v47  ;;  %1783 = vmatpush1.bf16.msra.mxu1 %v3157_v46 }
 0x1bd   :  { %1785 = vmatprep.subr.bf16.mxu1 %v3158_v47 }
 0x1bf   :  { %1659 = vmatpush1.bf16.msra.mxu0 %v3159_v4 }
 0x1c0   :  { %1661 = vmatprep.subr.bf16.mxu0 %v2483_v53  ;;  %1787 = vmatpush1.bf16.msra.mxu1 %v3159_v4 }
 0x1c1   :  { %1789 = vmatprep.subr.bf16.mxu1 %v2483_v53 }
 0x1c2   :  { %581 = vmatmul.mubr.f32.vlgmr.msra.gmra.mrb[2].mxu0 %v2644_v58  ;;  %v3160_v58 = vld [vmem:[#allocation33_spill] sm:$0xff] }
 0x1c3   :  { %1663 = vmatpush1.bf16.msra.mxu0 %v2492_v61  ;;  %651 = vmatprep.mubr.f32.mxu0 %v2646_v52  ;;  %v3173_v52 = vld [vmem:[#allocation46_spill] sm:$0xff] }
 0x1c4   :  { %1665 = vmatprep.subr.bf16.mxu0 %v2496_v0 }
 0x1c7   :  { %1667 = vmatpush1.bf16.msra.mxu0 %v2501_v10 }
 0x1c8   :  { %1669 = vmatprep.subr.bf16.mxu0 %v2505_v11 }
 0x1cb   :  { %1671 = vmatpush1.bf16.msra.mxu0 %v2508_v22 }
 0x1cc   :  { %1673 = vmatprep.subr.bf16.mxu0 %v2511_v27 }
 0x1cf   :  { %1675 = vmatpush1.bf16.msra.mxu0 %v2514_v35 }
 0x1d0   :  { %1677 = vmatprep.subr.bf16.mxu0 %v2517_v36 }
 0x1d3   :  { %1679 = vmatpush1.bf16.msra.mxu0 %v2520_v48 }
 0x1d4   :  { %1681 = vmatprep.subr.bf16.mxu0 %v2523_v49 }
 0x1d7   :  { %1683 = vmatpush1.bf16.msra.mxu0 %v2526_v1 }
 0x1d8   :  { %1685 = vmatprep.subr.bf16.mxu0 %v2529_v2 }
 0x1db   :  { %1687 = vmatpush1.bf16.msra.mxu0 %v2532_v18 }
 0x1dc   :  { %1689 = vmatprep.subr.bf16.mxu0 %v2535_v21 }
 0x1df   :  { %1691 = vmatpush1.bf16.msra.mxu0 %v2538_v39 }
 0x1e0   :  { %1693 = vmatprep.subr.bf16.mxu0 %v2541_v40 }
 0x1e3   :  { %1695 = vmatpush1.bf16.msra.mxu0 %v3160_v58 }
 0x1e4   :  { %1697 = vmatprep.subr.bf16.mxu0 %v3161_v9 }
 0x1e7   :  { %1699 = vmatpush1.bf16.msra.mxu0 %v3162_v30 }
 0x1e8   :  { %1701 = vmatprep.subr.bf16.mxu0 %v3163_v41  ;;  %v3174_v41 = vld [vmem:[#allocation47_spill] sm:$0xff] }
 0x1eb   :  { %1703 = vmatpush1.bf16.msra.mxu0 %v3164_v24  ;;  %v3175_v24 = vld [vmem:[#allocation8_spill] sm:$0xff] }
 0x1ec   :  { %1705 = vmatprep.subr.bf16.mxu0 %v3165_v6 }
 0x1ef   :  { %1707 = vmatpush1.bf16.msra.mxu0 %v3166_v15 }
 0x1f0   :  { %1709 = vmatprep.subr.bf16.mxu0 %v3167_v23 }
 0x1f3   :  { %1711 = vmatpush1.bf16.msra.mxu0 %v3168_v33 }
 0x1f4   :  { %1713 = vmatprep.subr.bf16.mxu0 %v3169_v60 }
 0x1f7   :  { %1715 = vmatpush1.bf16.msra.mxu0 %v3170_v34 }
 0x1f8   :  { %1717 = vmatprep.subr.bf16.mxu0 %v3171_v42 }
 0x1fb   :  { %1719 = vmatpush1.bf16.msra.mxu0 %v3172_v16 }
 0x1fc   :  { %1721 = vmatprep.subr.bf16.mxu0 %v3173_v52 }
 0x1ff   :  { %1723 = vmatpush1.bf16.msra.mxu0 %v3174_v41 }
 0x200   :  { %1853 = vmatprep.subr.bf16.mxu0 %v3175_v24 }
 0x202   :  { %652 = vmatmul.mubr.f32.vlgmr.msra.gmra.mrb[2].mxu0 %v2642_v59 }
 0x203   :  { %1855 = vmatpush1.bf16.msra.mxu0 %v2354_v7 }
 0x204   :  { %1857 = vmatprep.subr.bf16.mxu0 %v2356_v8 }
 0x207   :  { %1859 = vmatpush1.bf16.msra.mxu0 %v2361_v13 }
 0x208   :  { %1861 = vmatprep.subr.bf16.mxu0 %v2365_v14 }
 0x20b   :  { %1863 = vmatpush1.bf16.msra.mxu0 %v2369_v19 }
 0x20c   :  { %1865 = vmatprep.subr.bf16.mxu0 %v2373_v20 }
 0x20f   :  { %1867 = vmatpush1.bf16.msra.mxu0 %v2377_v25 }
 0x210   :  { %1869 = vmatprep.subr.bf16.mxu0 %v2381_v26 }
 0x213   :  { %1871 = vmatpush1.bf16.msra.mxu0 %v2385_v31 }
 0x214   :  { %1873 = vmatprep.subr.bf16.mxu0 %v2389_v32 }
 0x217   :  { %1875 = vmatpush1.bf16.msra.mxu0 %v2393_v37 }
 0x218   :  { %1877 = vmatprep.subr.bf16.mxu0 %v2397_v38 }
 0x21b   :  { %1879 = vmatpush1.bf16.msra.mxu0 %v2407_v44 }
 0x21c   :  { %1881 = vmatprep.subr.bf16.mxu0 %v2411_v45 }
 0x21f   :  { %1883 = vmatpush1.bf16.msra.mxu0 %v2415_v50 }
 0x220   :  { %1885 = vmatprep.subr.bf16.mxu0 %v2419_v51 }
 0x223   :  { %1887 = vmatpush1.bf16.msra.mxu0 %v2423_v56 }
 0x224   :  { %1889 = vmatprep.subr.bf16.mxu0 %v2427_v57 }
 0x227   :  { %1891 = vmatpush1.bf16.msra.mxu0 %v2431_v62  ;;  %v3177_v62 = vld [vmem:[#allocation49_spill] sm:$0xff] }
 0x228   :  { %1893 = vmatprep.subr.bf16.mxu0 %v2435_v63  ;;  %v3176_v63 = vld [vmem:[#allocation48_spill] sm:$0xff] }
 0x22b   :  { %1895 = vmatpush1.bf16.msra.mxu0 %v2439_v5 }
 0x22c   :  { %1897 = vmatprep.subr.bf16.mxu0 %v3150_v3 }
 0x22f   :  { %1899 = vmatpush1.bf16.msra.mxu0 %v3151_v28 }
 0x230   :  { %1901 = vmatprep.subr.bf16.mxu0 %v3152_v29 }
 0x233   :  { %1903 = vmatpush1.bf16.msra.mxu0 %v3153_v54 }
 0x234   :  { %1905 = vmatprep.subr.bf16.mxu0 %v3154_v55  ;;  %v660_v55 = vsub.s32 1, %v3176_v63 }
 0x237   :  { %1907 = vmatpush1.bf16.msra.mxu0 %v3155_v12  ;;  %v664_v12 = vsub.s32 5, %v3176_v63 }
 0x238   :  { %1909 = vmatprep.subr.bf16.mxu0 %v3156_v17  ;;  %v661_v17 = vrot.slane %v3177_v62, %v660_v55 }
 0x23a   :  { %v671_v57 = vrot.slane %v661_v17, %v660_v55  ;;  %v3202_v17 = vld [vmem:[#allocation31_spill] sm:$0xff] }
 0x23b   :  { %1911 = vmatpush1.bf16.msra.mxu0 %v3157_v46  ;;  %v681_v46 = vrot.slane %v2635_v43, %v660_v55 }
 0x23c   :  { %1913 = vmatprep.subr.bf16.mxu0 %v3158_v47  ;;  %v665_v47 = vrot.slane %v3177_v62, %v664_v12 }
 0x23e   :  { %v675_v56 = vrot.slane %v665_v47, %v660_v55 }
 0x23f   :  { %1915 = vmatpush1.bf16.msra.mxu0 %v3159_v4  ;;  %v685_v4 = vrot.slane %v2635_v43, %v664_v12 }
 0x240   :  { %1917 = vmatprep.subr.bf16.mxu0 %v2483_v53  ;;  %v691_v53 = vrot.slane %v681_v46, %v660_v55  ;;  %v3203_v46 = vld [vmem:[#allocation32_spill] sm:$0xff] }
 0x241   :  { %v695_v51 = vrot.slane %v685_v4, %v660_v55  ;;  %v3201_v55 = vld [vmem:[#allocation30_spill] sm:$0xff] }
 0x255   :  { %v438_v59 = vpop.f32.mrb[0].mxu0  ;;  %v509_v28 = vpop.f32.mrb[4].mxu1 }
 0x256   :  { %v514_v3 = vsub.f32 %v438_v59, %v509_v28  ;;  %v440_v29 = vpop.f32.mrb[1].mxu0  ;;  %v511_v5 = vpop.f32.mrb[5].mxu1 }
 0x257   :  { %v515_v54 = vsub.f32 %v440_v29, %v511_v5 }
 0x258   :  { %v676_v59 = vmul.f32 %v671_v57, %v514_v3  ;;  %v700_v50 = vmul.f32 %v691_v53, %v514_v3  ;;  %v3199_v3 = vld [vmem:[#allocation28_spill] sm:$0xff] }
 0x259   :  { %v677_v44 = vmul.f32 %v675_v56, %v515_v54  ;;  %v701_v63 = vmul.f32 %v695_v51, %v515_v54  ;;  %v3200_v54 = vld [vmem:[#allocation29_spill] sm:$0xff] }
 0x2d5   :  { %v653_v28 = vpop.f32.mrb[2].mxu0 }
 0x2d6   :  { %v696_v5 = vmul.f32 %v691_v53, %v653_v28  ;;  %v702_v29 = vmul.f32 %v671_v57, %v653_v28  ;;  %v655_v45 = vpop.f32.mrb[3].mxu0  ;;  %v3195_v57 = vld [vmem:[#allocation24_spill] sm:$0xff]  ;;  %v3198_v53 = vld [vmem:[#allocation27_spill] sm:$0xff] }
 0x2d7   :  { %v697_v38 = vmul.f32 %v695_v51, %v655_v45  ;;  %v703_v37 = vmul.f32 %v675_v56, %v655_v45  ;;  %v3191_v45 = vld [vmem:[#allocation20_spill] sm:$0xff]  ;;  %v3193_v51 = vld [vmem:[#allocation22_spill] sm:$0xff]  ;;  %v3194_v56 = vld [vmem:[#allocation23_spill] sm:$0xff] }
 0x2d8   :  { %v2788_v32 = vsub.f32 %v676_v59, %v696_v5  ;;  %v2790_v31 = vadd.f32 %v702_v29, %v700_v50  ;;  %v3192_v50 = vld [vmem:[#allocation21_spill] sm:$0xff] }
 0x2d9   :  { %v699_v62 = vsub.f32 %v677_v44, %v697_v38  ;;  %v705_v12 = vadd.f32 %v703_v37, %v701_v63  ;;  %v3178_v37 = vld [vmem:[#allocation36_spill] sm:$0xff]  ;;  %v3179_v38 = vld [vmem:[#allocation37_spill] sm:$0xff]  ;;  %v3190_v44 = vld [vmem:[#allocation19_spill] sm:$0xff] }
 0x2da   :  { %v3197_v63 = vld [vmem:[#allocation26_spill] sm:$0xff]  ;;  %v3205_v5 = vld [vmem:[#allocation49_spill] sm:$0xff] }
 0x2db   :  { %770 = vmatprep.mubr.f32.mxu1 %v699_v62  ;;  %914 = vmatprep.mubr.f32.mxu0 %v705_v12 }
 0x2dc   :  { %771 = vmatmul.mubr.f32.vlgmr.msra.gmra.mrb[6].mxu1 %v2788_v32  ;;  %915 = vmatmul.mubr.f32.vlgmr.msra.gmra.mrb[4].mxu0 %v2790_v31 }
 0x2dd   :  { %1791 = vmatpush1.bf16.msra.mxu1 %v2492_v61  ;;  %1919 = vmatpush1.bf16.msra.mxu0 %v2492_v61 }
 0x2de   :  { %841 = vmatprep.mubr.f32.mxu1 %v705_v12  ;;  %985 = vmatprep.mubr.f32.mxu0 %v699_v62  ;;  %v3196_v62 = vld [vmem:[#allocation25_spill] sm:$0xff] }
 0x2df   :  { %1793 = vmatprep.subr.bf16.mxu1 %v2496_v0  ;;  %1921 = vmatprep.subr.bf16.mxu0 %v2496_v0 }
 0x2e1   :  { %1795 = vmatpush1.bf16.msra.mxu1 %v2501_v10  ;;  %1923 = vmatpush1.bf16.msra.mxu0 %v2501_v10 }
 0x2e2   :  { %1797 = vmatprep.subr.bf16.mxu1 %v2505_v11  ;;  %1925 = vmatprep.subr.bf16.mxu0 %v2505_v11 }
 0x2e5   :  { %1799 = vmatpush1.bf16.msra.mxu1 %v2508_v22  ;;  %1927 = vmatpush1.bf16.msra.mxu0 %v2508_v22 }
 0x2e6   :  { %1801 = vmatprep.subr.bf16.mxu1 %v2511_v27  ;;  %1929 = vmatprep.subr.bf16.mxu0 %v2511_v27 }
 0x2e9   :  { %1803 = vmatpush1.bf16.msra.mxu1 %v2514_v35  ;;  %1931 = vmatpush1.bf16.msra.mxu0 %v2514_v35 }
 0x2ea   :  { %1805 = vmatprep.subr.bf16.mxu1 %v2517_v36  ;;  %1933 = vmatprep.subr.bf16.mxu0 %v2517_v36 }
 0x2ed   :  { %1807 = vmatpush1.bf16.msra.mxu1 %v2520_v48  ;;  %1935 = vmatpush1.bf16.msra.mxu0 %v2520_v48 }
 0x2ee   :  { %1809 = vmatprep.subr.bf16.mxu1 %v2523_v49  ;;  %1937 = vmatprep.subr.bf16.mxu0 %v2523_v49 }
 0x2f1   :  { %1811 = vmatpush1.bf16.msra.mxu1 %v2526_v1  ;;  %1939 = vmatpush1.bf16.msra.mxu0 %v2526_v1 }
 0x2f2   :  { %1813 = vmatprep.subr.bf16.mxu1 %v2529_v2  ;;  %1941 = vmatprep.subr.bf16.mxu0 %v2529_v2 }
 0x2f5   :  { %1815 = vmatpush1.bf16.msra.mxu1 %v2532_v18  ;;  %1943 = vmatpush1.bf16.msra.mxu0 %v2532_v18 }
 0x2f6   :  { %1817 = vmatprep.subr.bf16.mxu1 %v2535_v21  ;;  %1945 = vmatprep.subr.bf16.mxu0 %v2535_v21 }
 0x2f9   :  { %1819 = vmatpush1.bf16.msra.mxu1 %v2538_v39  ;;  %1947 = vmatpush1.bf16.msra.mxu0 %v2538_v39 }
 0x2fa   :  { %1821 = vmatprep.subr.bf16.mxu1 %v2541_v40  ;;  %1949 = vmatprep.subr.bf16.mxu0 %v2541_v40 }
 0x2fd   :  { %1823 = vmatpush1.bf16.msra.mxu1 %v3160_v58  ;;  %1951 = vmatpush1.bf16.msra.mxu0 %v3160_v58 }
 0x2fe   :  { %1825 = vmatprep.subr.bf16.mxu1 %v3161_v9  ;;  %1953 = vmatprep.subr.bf16.mxu0 %v3161_v9 }
 0x301   :  { %1827 = vmatpush1.bf16.msra.mxu1 %v3162_v30  ;;  %1955 = vmatpush1.bf16.msra.mxu0 %v3162_v30 }
 0x302   :  { %1829 = vmatprep.subr.bf16.mxu1 %v3178_v37  ;;  %1957 = vmatprep.subr.bf16.mxu0 %v3178_v37 }
 0x305   :  { %1831 = vmatpush1.bf16.msra.mxu1 %v3179_v38  ;;  %1959 = vmatpush1.bf16.msra.mxu0 %v3179_v38 }
 0x306   :  { %1833 = vmatprep.subr.bf16.mxu1 %v3165_v6  ;;  %1961 = vmatprep.subr.bf16.mxu0 %v3165_v6 }
 0x309   :  { %1835 = vmatpush1.bf16.msra.mxu1 %v3166_v15  ;;  %1963 = vmatpush1.bf16.msra.mxu0 %v3166_v15 }
 0x30a   :  { %1837 = vmatprep.subr.bf16.mxu1 %v3167_v23  ;;  %1965 = vmatprep.subr.bf16.mxu0 %v3167_v23 }
 0x30d   :  { %1839 = vmatpush1.bf16.msra.mxu1 %v3168_v33  ;;  %1967 = vmatpush1.bf16.msra.mxu0 %v3168_v33 }
 0x30e   :  { %1841 = vmatprep.subr.bf16.mxu1 %v3169_v60  ;;  %1969 = vmatprep.subr.bf16.mxu0 %v3169_v60 }
 0x311   :  { %1843 = vmatpush1.bf16.msra.mxu1 %v3170_v34  ;;  %1971 = vmatpush1.bf16.msra.mxu0 %v3170_v34 }
 0x312   :  { %1845 = vmatprep.subr.bf16.mxu1 %v3171_v42  ;;  %1973 = vmatprep.subr.bf16.mxu0 %v3171_v42 }
 0x315   :  { %1847 = vmatpush1.bf16.msra.mxu1 %v3172_v16  ;;  %1975 = vmatpush1.bf16.msra.mxu0 %v3172_v16 }
 0x316   :  { %1849 = vmatprep.subr.bf16.mxu1 %v3173_v52  ;;  %1977 = vmatprep.subr.bf16.mxu0 %v3173_v52 }
 0x319   :  { %1851 = vmatpush1.bf16.msra.mxu1 %v3174_v41  ;;  %1979 = vmatpush1.bf16.msra.mxu0 %v3174_v41 }
 0x31a   :  { %1981 = vmatprep.subr.bf16.mxu1 %v3175_v24  ;;  %2109 = vmatprep.subr.bf16.mxu0 %v3175_v24  ;;  %v3204_v24 = vld [vmem:[#allocation48_spill] sm:$0xff] }
 0x31b   :  { %v994_v28 = vsub.s32 2, %v3204_v24  ;;  %v998_v59 = vsub.s32 6, %v3204_v24 }
 0x31c   :  { %842 = vmatmul.mubr.f32.vlgmr.msra.gmra.mrb[8].mxu1 %v2790_v31  ;;  %986 = vmatmul.mubr.f32.vlgmr.msra.gmra.mrb[4].mxu0 %v2788_v32  ;;  %v3188_v31 = vld [vmem:[#allocation17_spill] sm:$0xff]  ;;  %v3189_v32 = vld [vmem:[#allocation18_spill] sm:$0xff] }
 0x31d   :  { %1983 = vmatpush1.bf16.msra.mxu1 %v2354_v7  ;;  %2111 = vmatpush1.bf16.msra.mxu0 %v2354_v7  ;;  %v3180_v7 = vld [vmem:[#allocation9_spill] sm:$0xff]  ;;  %v995_v29 = vrot.slane %v3205_v5, %v994_v28  ;;  %v1015_v12 = vrot.slane %v2635_v43, %v994_v28 }
 0x31e   :  { %1985 = vmatprep.subr.bf16.mxu1 %v2356_v8  ;;  %2113 = vmatprep.subr.bf16.mxu0 %v2356_v8  ;;  %v3181_v8 = vld [vmem:[#allocation10_spill] sm:$0xff] }
 0x321   :  { %1987 = vmatpush1.bf16.msra.mxu1 %v2361_v13  ;;  %2115 = vmatpush1.bf16.msra.mxu0 %v2361_v13  ;;  %v3182_v13 = vld [vmem:[#allocation11_spill] sm:$0xff] }
 0x322   :  { %1989 = vmatprep.subr.bf16.mxu1 %v2365_v14  ;;  %2117 = vmatprep.subr.bf16.mxu0 %v2365_v14  ;;  %v3183_v14 = vld [vmem:[#allocation12_spill] sm:$0xff] }
 0x325   :  { %1991 = vmatpush1.bf16.msra.mxu1 %v2369_v19  ;;  %2119 = vmatpush1.bf16.msra.mxu0 %v2369_v19  ;;  %v3184_v19 = vld [vmem:[#allocation13_spill] sm:$0xff] }
 0x326   :  { %1993 = vmatprep.subr.bf16.mxu1 %v2373_v20  ;;  %2121 = vmatprep.subr.bf16.mxu0 %v2373_v20  ;;  %v3185_v20 = vld [vmem:[#allocation14_spill] sm:$0xff] }
 0x329   :  { %1995 = vmatpush1.bf16.msra.mxu1 %v2377_v25  ;;  %2123 = vmatpush1.bf16.msra.mxu0 %v2377_v25  ;;  %v3186_v25 = vld [vmem:[#allocation15_spill] sm:$0xff] }
 0x32a   :  { %1997 = vmatprep.subr.bf16.mxu1 %v2381_v26  ;;  %2125 = vmatprep.subr.bf16.mxu0 %v2381_v26  ;;  %v3187_v26 = vld [vmem:[#allocation16_spill] sm:$0xff] }
 0x32d   :  { %1999 = vmatpush1.bf16.msra.mxu1 %v3180_v7  ;;  %2127 = vmatpush1.bf16.msra.mxu0 %v3180_v7  ;;  %v999_v7 = vrot.slane %v3205_v5, %v998_v59 }
 0x32e   :  { %2001 = vmatprep.subr.bf16.mxu1 %v3181_v8  ;;  %2129 = vmatprep.subr.bf16.mxu0 %v3181_v8  ;;  %v1019_v8 = vrot.slane %v2635_v43, %v998_v59 }
 0x331   :  { %2003 = vmatpush1.bf16.msra.mxu1 %v3182_v13  ;;  %2131 = vmatpush1.bf16.msra.mxu0 %v3182_v13  ;;  %v1005_v13 = vrot.slane %v995_v29, %v994_v28 }
 0x332   :  { %2005 = vmatprep.subr.bf16.mxu1 %v3183_v14  ;;  %2133 = vmatprep.subr.bf16.mxu0 %v3183_v14  ;;  %v1025_v14 = vrot.slane %v1015_v12, %v994_v28 }
 0x335   :  { %2007 = vmatpush1.bf16.msra.mxu1 %v3184_v19  ;;  %2135 = vmatpush1.bf16.msra.mxu0 %v3184_v19 }
 0x336   :  { %2009 = vmatprep.subr.bf16.mxu1 %v3185_v20  ;;  %2137 = vmatprep.subr.bf16.mxu0 %v3185_v20 }
 0x339   :  { %2011 = vmatpush1.bf16.msra.mxu1 %v3186_v25  ;;  %2139 = vmatpush1.bf16.msra.mxu0 %v3186_v25  ;;  %v1009_v25 = vrot.slane %v999_v7, %v994_v28 }
 0x33a   :  { %2013 = vmatprep.subr.bf16.mxu1 %v3187_v26  ;;  %2141 = vmatprep.subr.bf16.mxu0 %v3187_v26  ;;  %v1029_v26 = vrot.slane %v1019_v8, %v994_v28 }
 0x33d   :  { %2015 = vmatpush1.bf16.msra.mxu1 %v3188_v31  ;;  %2143 = vmatpush1.bf16.msra.mxu0 %v3188_v31 }
 0x33e   :  { %2017 = vmatprep.subr.bf16.mxu1 %v3189_v32  ;;  %2145 = vmatprep.subr.bf16.mxu0 %v3189_v32 }
 0x341   :  { %2019 = vmatpush1.bf16.msra.mxu1 %v3190_v44  ;;  %2147 = vmatpush1.bf16.msra.mxu0 %v3190_v44 }
 0x342   :  { %2021 = vmatprep.subr.bf16.mxu1 %v3191_v45  ;;  %2149 = vmatprep.subr.bf16.mxu0 %v3191_v45 }
 0x345   :  { %2023 = vmatpush1.bf16.msra.mxu1 %v3192_v50  ;;  %2151 = vmatpush1.bf16.msra.mxu0 %v3192_v50 }
 0x346   :  { %2025 = vmatprep.subr.bf16.mxu1 %v3193_v51  ;;  %2153 = vmatprep.subr.bf16.mxu0 %v3193_v51 }
 0x349   :  { %2027 = vmatpush1.bf16.msra.mxu1 %v3194_v56  ;;  %2155 = vmatpush1.bf16.msra.mxu0 %v3194_v56 }
 0x34a   :  { %2029 = vmatprep.subr.bf16.mxu1 %v3195_v57  ;;  %2157 = vmatprep.subr.bf16.mxu0 %v3195_v57 }
 0x34d   :  { %2031 = vmatpush1.bf16.msra.mxu1 %v3196_v62  ;;  %2159 = vmatpush1.bf16.msra.mxu0 %v3196_v62 }
 0x34e   :  { %2033 = vmatprep.subr.bf16.mxu1 %v3197_v63  ;;  %2161 = vmatprep.subr.bf16.mxu0 %v3197_v63 }
 0x351   :  { %2035 = vmatpush1.bf16.msra.mxu1 %v3198_v53  ;;  %2163 = vmatpush1.bf16.msra.mxu0 %v3198_v53 }
 0x352   :  { %2037 = vmatprep.subr.bf16.mxu1 %v3199_v3  ;;  %2165 = vmatprep.subr.bf16.mxu0 %v3199_v3 }
 0x355   :  { %2039 = vmatpush1.bf16.msra.mxu1 %v3200_v54  ;;  %2167 = vmatpush1.bf16.msra.mxu0 %v3200_v54 }
 0x356   :  { %2041 = vmatprep.subr.bf16.mxu1 %v3201_v55  ;;  %2169 = vmatprep.subr.bf16.mxu0 %v3201_v55 }
 0x359   :  { %2043 = vmatpush1.bf16.msra.mxu1 %v3202_v17  ;;  %2171 = vmatpush1.bf16.msra.mxu0 %v3202_v17 }
 0x35a   :  { %2045 = vmatprep.subr.bf16.mxu1 %v3203_v46  ;;  %2173 = vmatprep.subr.bf16.mxu0 %v3203_v46 }
 0x3af   :  { %v772_v47 = vpop.f32.mrb[6].mxu1 }
 0x3b0   :  { %v774_v4 = vpop.f32.mrb[7].mxu1 }
 0x3ef   :  { %v843_v19 = vpop.f32.mrb[8].mxu1  ;;  %v987_v20 = vpop.f32.mrb[4].mxu0 }
 0x3f0   :  { %v848_v31 = vsub.f32 %v772_v47, %v843_v19  ;;  %v845_v32 = vpop.f32.mrb[9].mxu1  ;;  %v989_v44 = vpop.f32.mrb[5].mxu0  ;;  %v1030_v56 = vmul.f32 %v1025_v14, %v987_v20  ;;  %v1036_v57 = vmul.f32 %v1005_v13, %v987_v20 }
 0x3f1   :  { %v849_v45 = vsub.f32 %v774_v4, %v845_v32  ;;  %v1031_v53 = vmul.f32 %v1029_v26, %v989_v44  ;;  %v1037_v3 = vmul.f32 %v1009_v25, %v989_v44 }
 0x3f2   :  { %v1010_v50 = vmul.f32 %v1005_v13, %v848_v31  ;;  %v1034_v51 = vmul.f32 %v1025_v14, %v848_v31 }
 0x3f3   :  { %v1011_v62 = vmul.f32 %v1009_v25, %v849_v45  ;;  %v1035_v63 = vmul.f32 %v1029_v26, %v849_v45 }
 0x3f4   :  { %v2930_v54 = vsub.f32 %v1010_v50, %v1030_v56  ;;  %v2932_v43 = vadd.f32 %v1036_v57, %v1034_v51 }
 0x3f5   :  { %v1033_v55 = vsub.f32 %v1011_v62, %v1031_v53  ;;  %v1039_v17 = vadd.f32 %v1037_v3, %v1035_v63 }
 0x3f7   :  { %1104 = vmatprep.mubr.f32.mxu1 %v1033_v55  ;;  %1248 = vmatprep.mubr.f32.mxu0 %v1039_v17 }
 0x3f8   :  { %1105 = vmatmul.mubr.f32.vlgmr.msra.gmra.mrb[10].mxu1 %v2930_v54  ;;  %1249 = vmatmul.mubr.f32.vlgmr.msra.gmra.mrb[6].mxu0 %v2932_v43 }
 0x3f9   :  { %2047 = vmatpush1.bf16.msra.mxu1 %v2492_v61  ;;  %2175 = vmatpush1.bf16.msra.mxu0 %v2492_v61 }
 0x3fa   :  { %1175 = vmatprep.mubr.f32.mxu1 %v1039_v17  ;;  %1319 = vmatprep.mubr.f32.mxu0 %v1033_v55 }
 0x3fb   :  { %2049 = vmatprep.subr.bf16.mxu1 %v2496_v0  ;;  %2177 = vmatprep.subr.bf16.mxu0 %v2496_v0 }
 0x3fd   :  { %2051 = vmatpush1.bf16.msra.mxu1 %v2501_v10  ;;  %2179 = vmatpush1.bf16.msra.mxu0 %v2501_v10 }
 0x3fe   :  { %2053 = vmatprep.subr.bf16.mxu1 %v2505_v11  ;;  %2181 = vmatprep.subr.bf16.mxu0 %v2505_v11 }
 0x401   :  { %2055 = vmatpush1.bf16.msra.mxu1 %v2508_v22  ;;  %2183 = vmatpush1.bf16.msra.mxu0 %v2508_v22 }
 0x402   :  { %2057 = vmatprep.subr.bf16.mxu1 %v2511_v27  ;;  %2185 = vmatprep.subr.bf16.mxu0 %v2511_v27 }
 0x405   :  { %2059 = vmatpush1.bf16.msra.mxu1 %v2514_v35  ;;  %2187 = vmatpush1.bf16.msra.mxu0 %v2514_v35 }
 0x406   :  { %2061 = vmatprep.subr.bf16.mxu1 %v2517_v36  ;;  %2189 = vmatprep.subr.bf16.mxu0 %v2517_v36 }
 0x409   :  { %2063 = vmatpush1.bf16.msra.mxu1 %v2520_v48  ;;  %2191 = vmatpush1.bf16.msra.mxu0 %v2520_v48 }
 0x40a   :  { %2065 = vmatprep.subr.bf16.mxu1 %v2523_v49  ;;  %2193 = vmatprep.subr.bf16.mxu0 %v2523_v49 }
 0x40d   :  { %2067 = vmatpush1.bf16.msra.mxu1 %v2526_v1  ;;  %2195 = vmatpush1.bf16.msra.mxu0 %v2526_v1 }
 0x40e   :  { %2069 = vmatprep.subr.bf16.mxu1 %v2529_v2  ;;  %2197 = vmatprep.subr.bf16.mxu0 %v2529_v2 }
 0x411   :  { %2071 = vmatpush1.bf16.msra.mxu1 %v2532_v18  ;;  %2199 = vmatpush1.bf16.msra.mxu0 %v2532_v18 }
 0x412   :  { %2073 = vmatprep.subr.bf16.mxu1 %v2535_v21  ;;  %2201 = vmatprep.subr.bf16.mxu0 %v2535_v21 }
 0x415   :  { %2075 = vmatpush1.bf16.msra.mxu1 %v2538_v39  ;;  %2203 = vmatpush1.bf16.msra.mxu0 %v2538_v39 }
 0x416   :  { %2077 = vmatprep.subr.bf16.mxu1 %v2541_v40  ;;  %2205 = vmatprep.subr.bf16.mxu0 %v2541_v40 }
 0x419   :  { %2079 = vmatpush1.bf16.msra.mxu1 %v3160_v58  ;;  %2207 = vmatpush1.bf16.msra.mxu0 %v3160_v58 }
 0x41a   :  { %2081 = vmatprep.subr.bf16.mxu1 %v3161_v9  ;;  %2209 = vmatprep.subr.bf16.mxu0 %v3161_v9 }
 0x41d   :  { %2083 = vmatpush1.bf16.msra.mxu1 %v3162_v30  ;;  %2211 = vmatpush1.bf16.msra.mxu0 %v3162_v30 }
 0x41e   :  { %2085 = vmatprep.subr.bf16.mxu1 %v3178_v37  ;;  %2213 = vmatprep.subr.bf16.mxu0 %v3178_v37 }
 0x421   :  { %2087 = vmatpush1.bf16.msra.mxu1 %v3179_v38  ;;  %2215 = vmatpush1.bf16.msra.mxu0 %v3179_v38 }
 0x422   :  { %2089 = vmatprep.subr.bf16.mxu1 %v3165_v6  ;;  %2217 = vmatprep.subr.bf16.mxu0 %v3165_v6 }
 0x425   :  { %2091 = vmatpush1.bf16.msra.mxu1 %v3166_v15  ;;  %2219 = vmatpush1.bf16.msra.mxu0 %v3166_v15 }
 0x426   :  { %2093 = vmatprep.subr.bf16.mxu1 %v3167_v23  ;;  %2221 = vmatprep.subr.bf16.mxu0 %v3167_v23 }
 0x429   :  { %2095 = vmatpush1.bf16.msra.mxu1 %v3168_v33  ;;  %2223 = vmatpush1.bf16.msra.mxu0 %v3168_v33 }
 0x42a   :  { %2097 = vmatprep.subr.bf16.mxu1 %v3169_v60  ;;  %2225 = vmatprep.subr.bf16.mxu0 %v3169_v60 }
 0x42d   :  { %2099 = vmatpush1.bf16.msra.mxu1 %v3170_v34  ;;  %2227 = vmatpush1.bf16.msra.mxu0 %v3170_v34 }
 0x42e   :  { %2101 = vmatprep.subr.bf16.mxu1 %v3171_v42  ;;  %2229 = vmatprep.subr.bf16.mxu0 %v3171_v42 }
 0x431   :  { %2103 = vmatpush1.bf16.msra.mxu1 %v3172_v16  ;;  %2231 = vmatpush1.bf16.msra.mxu0 %v3172_v16 }
 0x432   :  { %2105 = vmatprep.subr.bf16.mxu1 %v3173_v52  ;;  %2233 = vmatprep.subr.bf16.mxu0 %v3173_v52 }
 0x435   :  { %2107 = vmatpush1.bf16.msra.mxu1 %v3174_v41  ;;  %2235 = vmatpush1.bf16.msra.mxu0 %v3174_v41 }
 0x438   :  { %1176 = vmatmul.mubr.f32.vlgmr.msra.gmra.mrb[12].mxu1 %v2932_v43  ;;  %1320 = vmatmul.mubr.f32.vlgmr.msra.gmra.mrb[6].mxu0 %v2930_v54 }
 0x4cb   :  { %v1106_v61 = vpop.f32.mrb[10].mxu1 }
 0x4cc   :  { %v1108_v0 = vpop.f32.mrb[11].mxu1 }
 0x50b   :  { %v1177_v10 = vpop.f32.mrb[12].mxu1  ;;  %v1321_v11 = vpop.f32.mrb[6].mxu0 }
 0x50c   :  { %v1182_v22 = vsub.f32 %v1106_v61, %v1177_v10  ;;  %v1179_v27 = vpop.f32.mrb[13].mxu1  ;;  %v1323_v35 = vpop.f32.mrb[7].mxu0  ;;  %v1328_v49 = vmul.f32 %v1321_v11, %v1321_v11 }
 0x50d   :  { %v1183_v36 = vsub.f32 %v1108_v0, %v1179_v27  ;;  %v1329_v2 = vmul.f32 %v1323_v35, %v1323_v35 }
 0x50e   :  { %v1326_v48 = vmul.f32 %v1182_v22, %v1182_v22 }
 0x50f   :  { %v1327_v1 = vmul.f32 %v1183_v36, %v1183_v36 }
 0x510   :  { %v1330_v18 = vadd.f32 %v1328_v49, %v1326_v48 }
 0x511   :  { %v1331_v21 = vadd.f32 %v1329_v2, %v1327_v1 }
 0x512   :  { %1332 = vst [vmem:[%s3011_s5] sm:$0xff] %v1330_v18 }
 0x513   :  { %1333 = vst [vmem:[%s3011_s5 + $0x8] sm:$0xff] %v1331_v21 }
 0x514   :  { %1338 = vsyncpa [#allocation3], 1 }
 0x515   :  { %1339 = vsyncpa [#allocation5], 1 }

</bundles_post_ra>
